<compile_context>
chip_gen: v6e
topology: v6e:2x2x1
jax: 0.10.0
libtpu: 0.0.40
codegen_flags: <defaults>
</compile_context>

<pallas_src>
import functools
import math

import jax
import jax.numpy as jnp
from jax import lax
from jax.experimental import pallas as pl
from jax.experimental.pallas import tpu as pltpu


def _gelu(x):
    # exact erf-based GELU == torch.nn.functional.gelu default
    return 0.5 * x * (1.0 + lax.erf(x * (1.0 / math.sqrt(2.0))))


def _choose_tile_p(P, W, target=2048):
    """Largest strip length that divides P, is a whole number of image rows
    (multiple of W) and lane-dense (multiple of 128), not exceeding `target`.
    Falls back to the full extent (always a legal BlockSpec) if none exists."""
    if P <= target:
        return P
    step = W * 128 // math.gcd(W, 128)          # lcm(W, 128)
    t = (target // step) * step
    while t >= step:
        if P % t == 0:
            return t
        t -= step
    return P


def feedforward_kernel(xp_ref, xc_ref, xn_ref, w_in_ref, b_in_ref, w_dw_ref,
                       b_dw_ref, w_out_ref, b_out_ref, o_ref, *, H, W):
    # xp/xc/xn_ref: (Cin, tile_p)  previous / current / next strip of x
    # o_ref:        (Cout, tile_p)
    # w_in_ref:     (C2, Cin)      w_out_ref: (Cout, hid)
    # b_*_ref:      (C, 1)         w_dw_ref:  (9, C2, 1), row k=(dy+1)*3+(dx+1)
    HW = H * W
    C2 = w_in_ref.shape[0]
    hid = C2 // 2
    tile_p = xc_ref.shape[-1]
    wext = tile_p + 2 * W                      # strip + one halo row each side
    wpad = ((wext + 127) // 128) * 128         # keep rolls on a 128-multiple width
    f32 = jnp.float32

    # hoisted once per strip: weights, biases, border masks
    w_in = w_in_ref[...]
    w_out = w_out_ref[...]
    w_dw = w_dw_ref[...]                       # (9, C2, 1)
    b_in = b_in_ref[...]
    b_dw = b_dw_ref[...]
    b_out = b_out_ref[...]

    # ---- project_in on the strip + recomputed 1-row halos (MXU) ----
    y_c = jnp.dot(w_in, xc_ref[...], preferred_element_type=f32) + b_in       # (C2, tile_p)
    y_u = jnp.dot(w_in, xp_ref[:, tile_p - W:], preferred_element_type=f32) + b_in  # (C2, W)
    y_d = jnp.dot(w_in, xn_ref[:, :W], preferred_element_type=f32) + b_in           # (C2, W)
    pieces = [y_u, y_c, y_d]
    if wpad > wext:
        pieces.append(jnp.zeros((C2, wpad - wext), f32))
    y_ext = jnp.concatenate(pieces, axis=1)                                   # (C2, wpad)
    # y_ext column e <-> global position strip_start - W + e

    # ---- position / border masks (computed once) ----
    strip_start = pl.program_id(0) * tile_p
    pos = strip_start + lax.broadcasted_iota(jnp.int32, (1, tile_p), 1)       # global pos
    q = lax.rem(pos, HW)                                                      # pos in image
    ok_up = q >= W                              # dy=-1 neighbour exists
    ok_dn = q < HW - W                          # dy=+1 neighbour exists
    col_ext = lax.rem(lax.broadcasted_iota(jnp.int32, (1, wpad), 1), W)
    # horizontally pre-masked sources, shared across all dy values:
    src_c = y_ext
    src_l = jnp.where(col_ext == W - 1, 0.0, y_ext)   # sources for dx = -1 taps
    src_r = jnp.where(col_ext == 0, 0.0, y_ext)       # sources for dx = +1 taps

    def tap(src, s):
        # t[:, p] = src[:, p + W + s]; any wrap / pad read lands on a position
        # that the horizontal pre-masks or the vertical row masks zero anyway.
        shift = (-(W + s)) % wpad
        t = src if shift == 0 else pltpu.roll(src, shift, axis=1)
        return t[:, :tile_p]

    # ---- depthwise 3x3, padding=1, register-resident (XLU rolls) ----
    acc = y_c * w_dw[4] + b_dw                                   # center tap + bias
    up = (tap(src_l, -W - 1) * w_dw[0] + tap(src_c, -W) * w_dw[1]
          + tap(src_r, -W + 1) * w_dw[2])                        # dy = -1 row
    acc = acc + jnp.where(ok_up, up, 0.0)
    acc = acc + tap(src_l, -1) * w_dw[3] + tap(src_r, 1) * w_dw[5]  # dy = 0 row
    dn = (tap(src_l, W - 1) * w_dw[6] + tap(src_c, W) * w_dw[7]
          + tap(src_r, W + 1) * w_dw[8])                         # dy = +1 row
    acc = acc + jnp.where(ok_dn, dn, 0.0)

    # ---- chunk(2, dim=channels) + gated GELU mix ----
    x1 = acc[:hid]
    x2 = acc[hid:]
    g = _gelu(x2) * x1 + _gelu(x1) * x2                          # (hid, tile_p)

    # ---- project_out: 1x1 conv == (Cout, hid) @ (hid, tile_p) ----
    out = jnp.dot(w_out, g, preferred_element_type=f32) + b_out
    o_ref[...] = out.astype(o_ref.dtype)


def feedforward(x_nchw, w_in, b_in, w_dw, b_dw, w_out, b_out, *,
                tile_p=None, vmem_limit_bytes=None):
    """x_nchw: (B, Cin, H, W).  Weights in the nn.Module's natural layouts:
    w_in (C2, Cin), b_in (C2,), w_dw (C2, 3, 3), b_dw (C2,),
    w_out (Cout, hid), b_out (Cout,).

    tile_p: strip length along the flattened (B*H*W) position axis.  Defaults
    to <=2048 lanes (safe for v7x's 64 MiB VMEM); on v5e/v6e (128 MiB) a 2x
    larger strip with a higher vmem_limit_bytes amortizes per-strip setup."""
    B, Cin, H, W = x_nchw.shape
    C2 = w_in.shape[0]
    Cout = w_out.shape[0]
    P = B * H * W

    if tile_p is None:
        tile_p = _choose_tile_p(P, W)
    assert P % tile_p == 0 and tile_p % W == 0
    nstrips = P // tile_p

    if vmem_limit_bytes is None:
        wext = tile_p + 2 * W
        est = 4 * (2 * (3 * Cin + Cout) * tile_p      # double-buffered x blocks + out block
                   + 6 * C2 * wext                    # y_ext + masked sources + acc/partials
                   + 2 * (C2 // 2) * tile_p           # gating temporaries
                   + C2 * Cin + Cout * (C2 // 2) + 12 * C2 + Cout)
        vmem_limit_bytes = int(min(max(2 * est, 32 * 1024 * 1024), 64 * 1024 * 1024))

    # lane-dense layout: channels-major, all images concatenated along lanes.
    x_t = jnp.transpose(x_nchw, (1, 0, 2, 3)).reshape(Cin, P)
    w_dw_k = w_dw.reshape(C2, 9).T.reshape(9, C2, 1)   # row k = (dy+1)*3+(dx+1)
    b_in_c = b_in.reshape(C2, 1)
    b_dw_c = b_dw.reshape(C2, 1)
    b_out_c = b_out.reshape(Cout, 1)

    kernel = functools.partial(feedforward_kernel, H=H, W=W)

    last = nstrips - 1
    # TODO(synk): the +-1 halo strips re-DMA a whole x strip each; a manual
    # (pl.ANY + make_async_copy) path could fetch just one row instead.
    x_prev = pl.BlockSpec((Cin, tile_p), lambda i: (0, jnp.maximum(i - 1, 0)))
    x_cur = pl.BlockSpec((Cin, tile_p), lambda i: (0, i))
    x_next = pl.BlockSpec((Cin, tile_p), lambda i: (0, jnp.minimum(i + 1, last)))
    const2 = lambda i: (0, 0)
    const3 = lambda i: (0, 0, 0)

    out_t = pl.pallas_call(
        kernel,
        out_shape=jax.ShapeDtypeStruct((Cout, P), x_nchw.dtype),
        grid_spec=pltpu.PrefetchScalarGridSpec(
            num_scalar_prefetch=0,
            grid=(nstrips,),                   # lane-dense spatial strips
            in_specs=[
                x_prev, x_cur, x_next,
                pl.BlockSpec(w_in.shape, const2),
                pl.BlockSpec((C2, 1), const2),
                pl.BlockSpec((9, C2, 1), const3),
                pl.BlockSpec((C2, 1), const2),
                pl.BlockSpec(w_out.shape, const2),
                pl.BlockSpec((Cout, 1), const2),
            ],
            out_specs=pl.BlockSpec((Cout, tile_p), lambda i: (0, i)),
        ),
        compiler_params=pltpu.CompilerParams(
            dimension_semantics=("parallel",),
            vmem_limit_bytes=vmem_limit_bytes),
    )(x_t, x_t, x_t, w_in, b_in_c, w_dw_k, b_dw_c, w_out, b_out_c)

    return jnp.transpose(out_t.reshape(Cout, B, H, W), (1, 0, 2, 3))


def reference(x_nchw, w_in, b_in, w_dw, b_dw, w_out, b_out):
    # plain-JAX NCHW reference (HIGHEST precision matmuls)
    C2 = w_in.shape[0]
    hid = C2 // 2
    hp = lax.Precision.HIGHEST
    y = jnp.einsum('oc,bchw->bohw', w_in, x_nchw, precision=hp)
    y = y + b_in[None, :, None, None]
    y = lax.conv_general_dilated(
        y, w_dw[:, None, :, :], window_strides=(1, 1),
        padding=((1, 1), (1, 1)),
        dimension_numbers=('NCHW', 'OIHW', 'NCHW'),
        feature_group_count=C2, precision=hp)
    y = y + b_dw[None, :, None, None]
    x1, x2 = y[:, :hid], y[:, hid:]
    g = _gelu(x2) * x1 + _gelu(x1) * x2
    out = jnp.einsum('oc,bchw->bohw', w_out, g, precision=hp)
    return out + b_out[None, :, None, None]


if __name__ == "__main__":
    # module config: dim=8, ffn_expansion_factor=2, bias=True
    B, H, W = 2, 16, 16
    dim = 8
    ffn_expansion_factor = 2.0
    hidden = int(dim * ffn_expansion_factor)   # 16
    C2 = 2 * hidden                            # 32

    key = jax.random.PRNGKey(0)
    k = jax.random.split(key, 7)
    x = jax.random.normal(k[0], (B, dim, H, W), jnp.float32)           # NCHW input
    # deterministic synthetic parameters (shapes follow the nn.Module __init__)
    w_in = jax.random.normal(k[1], (C2, dim), jnp.float32) * 0.2       # project_in (out,in)
    b_in = jax.random.normal(k[2], (C2,), jnp.float32) * 0.1
    w_dw = jax.random.normal(k[3], (C2, 3, 3), jnp.float32) * 0.2      # dwconv (C2,1,3,3) squeezed
    b_dw = jax.random.normal(k[4], (C2,), jnp.float32) * 0.1
    w_out = jax.random.normal(k[5], (dim, hidden), jnp.float32) * 0.2  # project_out (out,in)
    b_out = jax.random.normal(k[6], (dim,), jnp.float32) * 0.1

    out = jax.jit(feedforward)(x, w_in, b_in, w_dw, b_dw, w_out, b_out)
    out = jax.block_until_ready(out)

    ref = reference(x, w_in, b_in, w_dw, b_dw, w_out, b_out)
    err = float(jnp.max(jnp.abs(out - ref)))
    # Tolerance accommodates TPU default matmul precision (bf16 passes on the
    # MXU) vs. the HIGHEST-precision reference; genuine layout / halo / weight
    # indexing bugs produce O(0.1 - 1) errors and still trip this.
    assert err < 2e-2, f"max abs err={err}"
    print("KERNEL_OK")
</pallas_src>

<mosaic_0001>
module attributes {stable_mosaic.version = 11 : i64} {
  func.func @feedforward_kernel(%arg0: i32, %arg1: memref<8x512xf32, #tpu.memory_space<vmem>>, %arg2: memref<8x512xf32, #tpu.memory_space<vmem>>, %arg3: memref<8x512xf32, #tpu.memory_space<vmem>>, %arg4: memref<32x8xf32, #tpu.memory_space<vmem>>, %arg5: memref<32x1xf32, #tpu.memory_space<vmem>>, %arg6: memref<9x32x1xf32, #tpu.memory_space<vmem>>, %arg7: memref<32x1xf32, #tpu.memory_space<vmem>>, %arg8: memref<8x16xf32, #tpu.memory_space<vmem>>, %arg9: memref<8x1xf32, #tpu.memory_space<vmem>>, %arg10: memref<8x512xf32, #tpu.memory_space<vmem>>) attributes {dimension_semantics = [#tpu.dimension_semantics<parallel>], iteration_bounds = array<i64: 1>, scalar_prefetch = 0 : i64, scratch_operands = 0 : i64, tpu.core_type = #tpu.core_type<tc>, window_params = [{transform_indices = @transform_0, window_bounds = array<i64: 8, 512>}, {transform_indices = @transform_1, window_bounds = array<i64: 8, 512>}, {transform_indices = @transform_2, window_bounds = array<i64: 8, 512>}, {pipeline_mode = #tpu.pipeline_mode<synchronous>, transform_indices = @transform_3, window_bounds = array<i64: 32, 8>}, {pipeline_mode = #tpu.pipeline_mode<synchronous>, transform_indices = @transform_4, window_bounds = array<i64: 32, 1>}, {pipeline_mode = #tpu.pipeline_mode<synchronous>, transform_indices = @transform_5, window_bounds = array<i64: 9, 32, 1>}, {pipeline_mode = #tpu.pipeline_mode<synchronous>, transform_indices = @transform_6, window_bounds = array<i64: 32, 1>}, {pipeline_mode = #tpu.pipeline_mode<synchronous>, transform_indices = @transform_7, window_bounds = array<i64: 8, 16>}, {pipeline_mode = #tpu.pipeline_mode<synchronous>, transform_indices = @transform_8, window_bounds = array<i64: 8, 1>}, {transform_indices = @transform_9, window_bounds = array<i64: 8, 512>}]} {
    %c0 = arith.constant 0 : index
    %c0_0 = arith.constant 0 : index
    %0 = vector.load %arg4[%c0, %c0_0] : memref<32x8xf32, #tpu.memory_space<vmem>>, vector<32x8xf32>
    %c0_1 = arith.constant 0 : index
    %c0_2 = arith.constant 0 : index
    %1 = vector.load %arg8[%c0_1, %c0_2] : memref<8x16xf32, #tpu.memory_space<vmem>>, vector<8x16xf32>
    %c0_3 = arith.constant 0 : index
    %c0_4 = arith.constant 0 : index
    %c0_5 = arith.constant 0 : index
    %2 = vector.load %arg6[%c0_3, %c0_4, %c0_5] : memref<9x32x1xf32, #tpu.memory_space<vmem>>, vector<9x32x1xf32>
    %c0_6 = arith.constant 0 : index
    %c0_7 = arith.constant 0 : index
    %3 = vector.load %arg5[%c0_6, %c0_7] : memref<32x1xf32, #tpu.memory_space<vmem>>, vector<32x1xf32>
    %c0_8 = arith.constant 0 : index
    %c0_9 = arith.constant 0 : index
    %4 = vector.load %arg7[%c0_8, %c0_9] : memref<32x1xf32, #tpu.memory_space<vmem>>, vector<32x1xf32>
    %c0_10 = arith.constant 0 : index
    %c0_11 = arith.constant 0 : index
    %5 = vector.load %arg9[%c0_10, %c0_11] : memref<8x1xf32, #tpu.memory_space<vmem>>, vector<8x1xf32>
    %c0_12 = arith.constant 0 : index
    %c0_13 = arith.constant 0 : index
    %6 = vector.load %arg2[%c0_12, %c0_13] : memref<8x512xf32, #tpu.memory_space<vmem>>, vector<8x512xf32>
    %cst = arith.constant dense<0.000000e+00> : vector<32x512xf32>
    %7 = tpu.matmul %0, %6, %cst {dimension_numbers = #tpu.dot_dimension_numbers<[1], [0], [0], [1], [0, 0, 1, 1], [], []>} : vector<32x8xf32>, vector<8x512xf32>, vector<32x512xf32> -> vector<32x512xf32>
    %8 = vector.broadcast %3 : vector<32x1xf32> to vector<32x512xf32>
    %9 = arith.addf %7, %8 : vector<32x512xf32>
    %c0_14 = arith.constant 0 : index
    %c496 = arith.constant 496 : index
    %10 = vector.load %arg1[%c0_14, %c496] : memref<8x512xf32, #tpu.memory_space<vmem>>, vector<8x16xf32>
    %cst_15 = arith.constant dense<0.000000e+00> : vector<32x16xf32>
    %11 = tpu.matmul %0, %10, %cst_15 {dimension_numbers = #tpu.dot_dimension_numbers<[1], [0], [0], [1], [0, 0, 1, 1], [], []>} : vector<32x8xf32>, vector<8x16xf32>, vector<32x16xf32> -> vector<32x16xf32>
    %12 = vector.broadcast %3 : vector<32x1xf32> to vector<32x16xf32>
    %13 = arith.addf %11, %12 : vector<32x16xf32>
    %c0_16 = arith.constant 0 : index
    %c0_17 = arith.constant 0 : index
    %14 = vector.load %arg3[%c0_16, %c0_17] : memref<8x512xf32, #tpu.memory_space<vmem>>, vector<8x16xf32>
    %cst_18 = arith.constant dense<0.000000e+00> : vector<32x16xf32>
    %15 = tpu.matmul %0, %14, %cst_18 {dimension_numbers = #tpu.dot_dimension_numbers<[1], [0], [0], [1], [0, 0, 1, 1], [], []>} : vector<32x8xf32>, vector<8x16xf32>, vector<32x16xf32> -> vector<32x16xf32>
    %16 = vector.broadcast %3 : vector<32x1xf32> to vector<32x16xf32>
    %17 = arith.addf %15, %16 : vector<32x16xf32>
    %cst_19 = arith.constant 0.000000e+00 : f32
    %18 = vector.broadcast %cst_19 : f32 to vector<32x96xf32>
    %19 = tpu.concatenate %13, %9, %17, %18 in 1 : vector<32x16xf32>, vector<32x512xf32>, vector<32x16xf32>, vector<32x96xf32> -> vector<32x640xf32>
    %c512_i32 = arith.constant 512 : i32
    %20 = arith.muli %arg0, %c512_i32 : i32
    %21 = tpu.iota {dimensions = array<i32: 1>} : vector<1x512xi32>
    %22 = vector.broadcast %20 : i32 to vector<1x512xi32>
    %23 = arith.addi %22, %21 : vector<1x512xi32>
    %c256_i32 = arith.constant 256 : i32
    %24 = vector.broadcast %c256_i32 : i32 to vector<1x512xi32>
    %25 = arith.remsi %23, %24 : vector<1x512xi32>
    %c16_i32 = arith.constant 16 : i32
    %26 = vector.broadcast %c16_i32 : i32 to vector<1x512xi32>
    %27 = arith.cmpi sge, %25, %26 : vector<1x512xi32>
    %c240_i32 = arith.constant 240 : i32
    %28 = vector.broadcast %c240_i32 : i32 to vector<1x512xi32>
    %29 = arith.cmpi slt, %25, %28 : vector<1x512xi32>
    %30 = tpu.iota {dimensions = array<i32: 1>} : vector<1x640xi32>
    %c16_i32_20 = arith.constant 16 : i32
    %31 = vector.broadcast %c16_i32_20 : i32 to vector<1x640xi32>
    %32 = arith.remsi %30, %31 : vector<1x640xi32>
    %c15_i32 = arith.constant 15 : i32
    %33 = vector.broadcast %c15_i32 : i32 to vector<1x640xi32>
    %34 = arith.cmpi eq, %32, %33 : vector<1x640xi32>
    %cst_21 = arith.constant 0.000000e+00 : f32
    %35 = vector.shape_cast %34 : vector<1x640xi1> to vector<1x640xi1>
    %36 = vector.broadcast %35 : vector<1x640xi1> to vector<32x640xi1>
    %37 = vector.broadcast %cst_21 : f32 to vector<32x640xf32>
    %38 = arith.select %36, %37, %19 : vector<32x640xi1>, vector<32x640xf32>
    %c0_i32 = arith.constant 0 : i32
    %39 = vector.broadcast %c0_i32 : i32 to vector<1x640xi32>
    %40 = arith.cmpi eq, %32, %39 : vector<1x640xi32>
    %cst_22 = arith.constant 0.000000e+00 : f32
    %41 = vector.shape_cast %40 : vector<1x640xi1> to vector<1x640xi1>
    %42 = vector.broadcast %41 : vector<1x640xi1> to vector<32x640xi1>
    %43 = vector.broadcast %cst_22 : f32 to vector<32x640xf32>
    %44 = arith.select %42, %43, %19 : vector<32x640xi1>, vector<32x640xf32>
    %45 = vector.extract_strided_slice %2 {offsets = [4, 0, 0], sizes = [1, 32, 1], strides = [1, 1, 1]} : vector<9x32x1xf32> to vector<1x32x1xf32>
    %46 = vector.shape_cast %45 : vector<1x32x1xf32> to vector<32x1xf32>
    %47 = vector.broadcast %46 : vector<32x1xf32> to vector<32x512xf32>
    %48 = arith.mulf %9, %47 : vector<32x512xf32>
    %49 = vector.broadcast %4 : vector<32x1xf32> to vector<32x512xf32>
    %50 = arith.addf %48, %49 : vector<32x512xf32>
    %c1_i32 = arith.constant 1 : i32
    %51 = tpu.dynamic_rotate %38 by %c1_i32 dim 1 : vector<32x640xf32>, i32 -> vector<32x640xf32>
    %52 = vector.extract_strided_slice %51 {offsets = [0, 0], sizes = [32, 512], strides = [1, 1]} : vector<32x640xf32> to vector<32x512xf32>
    %53 = vector.extract_strided_slice %2 {offsets = [0, 0, 0], sizes = [1, 32, 1], strides = [1, 1, 1]} : vector<9x32x1xf32> to vector<1x32x1xf32>
    %54 = vector.shape_cast %53 : vector<1x32x1xf32> to vector<32x1xf32>
    %55 = vector.broadcast %54 : vector<32x1xf32> to vector<32x512xf32>
    %56 = arith.mulf %52, %55 : vector<32x512xf32>
    %57 = vector.extract_strided_slice %19 {offsets = [0, 0], sizes = [32, 512], strides = [1, 1]} : vector<32x640xf32> to vector<32x512xf32>
    %58 = vector.extract_strided_slice %2 {offsets = [1, 0, 0], sizes = [1, 32, 1], strides = [1, 1, 1]} : vector<9x32x1xf32> to vector<1x32x1xf32>
    %59 = vector.shape_cast %58 : vector<1x32x1xf32> to vector<32x1xf32>
    %60 = vector.broadcast %59 : vector<32x1xf32> to vector<32x512xf32>
    %61 = arith.mulf %57, %60 : vector<32x512xf32>
    %62 = arith.addf %56, %61 : vector<32x512xf32>
    %c639_i32 = arith.constant 639 : i32
    %63 = tpu.dynamic_rotate %44 by %c639_i32 dim 1 : vector<32x640xf32>, i32 -> vector<32x640xf32>
    %64 = vector.extract_strided_slice %63 {offsets = [0, 0], sizes = [32, 512], strides = [1, 1]} : vector<32x640xf32> to vector<32x512xf32>
    %65 = vector.extract_strided_slice %2 {offsets = [2, 0, 0], sizes = [1, 32, 1], strides = [1, 1, 1]} : vector<9x32x1xf32> to vector<1x32x1xf32>
    %66 = vector.shape_cast %65 : vector<1x32x1xf32> to vector<32x1xf32>
    %67 = vector.broadcast %66 : vector<32x1xf32> to vector<32x512xf32>
    %68 = arith.mulf %64, %67 : vector<32x512xf32>
    %69 = arith.addf %62, %68 : vector<32x512xf32>
    %cst_23 = arith.constant 0.000000e+00 : f32
    %70 = vector.shape_cast %27 : vector<1x512xi1> to vector<1x512xi1>
    %71 = vector.broadcast %70 : vector<1x512xi1> to vector<32x512xi1>
    %72 = vector.broadcast %cst_23 : f32 to vector<32x512xf32>
    %73 = arith.select %71, %69, %72 : vector<32x512xi1>, vector<32x512xf32>
    %74 = arith.addf %50, %73 : vector<32x512xf32>
    %c625_i32 = arith.constant 625 : i32
    %75 = tpu.dynamic_rotate %38 by %c625_i32 dim 1 : vector<32x640xf32>, i32 -> vector<32x640xf32>
    %76 = vector.extract_strided_slice %75 {offsets = [0, 0], sizes = [32, 512], strides = [1, 1]} : vector<32x640xf32> to vector<32x512xf32>
    %77 = vector.extract_strided_slice %2 {offsets = [3, 0, 0], sizes = [1, 32, 1], strides = [1, 1, 1]} : vector<9x32x1xf32> to vector<1x32x1xf32>
    %78 = vector.shape_cast %77 : vector<1x32x1xf32> to vector<32x1xf32>
    %79 = vector.broadcast %78 : vector<32x1xf32> to vector<32x512xf32>
    %80 = arith.mulf %76, %79 : vector<32x512xf32>
    %81 = arith.addf %74, %80 : vector<32x512xf32>
    %c623_i32 = arith.constant 623 : i32
    %82 = tpu.dynamic_rotate %44 by %c623_i32 dim 1 : vector<32x640xf32>, i32 -> vector<32x640xf32>
    %83 = vector.extract_strided_slice %82 {offsets = [0, 0], sizes = [32, 512], strides = [1, 1]} : vector<32x640xf32> to vector<32x512xf32>
    %84 = vector.extract_strided_slice %2 {offsets = [5, 0, 0], sizes = [1, 32, 1], strides = [1, 1, 1]} : vector<9x32x1xf32> to vector<1x32x1xf32>
    %85 = vector.shape_cast %84 : vector<1x32x1xf32> to vector<32x1xf32>
    %86 = vector.broadcast %85 : vector<32x1xf32> to vector<32x512xf32>
    %87 = arith.mulf %83, %86 : vector<32x512xf32>
    %88 = arith.addf %81, %87 : vector<32x512xf32>
    %c609_i32 = arith.constant 609 : i32
    %89 = tpu.dynamic_rotate %38 by %c609_i32 dim 1 : vector<32x640xf32>, i32 -> vector<32x640xf32>
    %90 = vector.extract_strided_slice %89 {offsets = [0, 0], sizes = [32, 512], strides = [1, 1]} : vector<32x640xf32> to vector<32x512xf32>
    %91 = vector.extract_strided_slice %2 {offsets = [6, 0, 0], sizes = [1, 32, 1], strides = [1, 1, 1]} : vector<9x32x1xf32> to vector<1x32x1xf32>
    %92 = vector.shape_cast %91 : vector<1x32x1xf32> to vector<32x1xf32>
    %93 = vector.broadcast %92 : vector<32x1xf32> to vector<32x512xf32>
    %94 = arith.mulf %90, %93 : vector<32x512xf32>
    %c608_i32 = arith.constant 608 : i32
    %95 = tpu.dynamic_rotate %19 by %c608_i32 dim 1 : vector<32x640xf32>, i32 -> vector<32x640xf32>
    %96 = vector.extract_strided_slice %95 {offsets = [0, 0], sizes = [32, 512], strides = [1, 1]} : vector<32x640xf32> to vector<32x512xf32>
    %97 = vector.extract_strided_slice %2 {offsets = [7, 0, 0], sizes = [1, 32, 1], strides = [1, 1, 1]} : vector<9x32x1xf32> to vector<1x32x1xf32>
    %98 = vector.shape_cast %97 : vector<1x32x1xf32> to vector<32x1xf32>
    %99 = vector.broadcast %98 : vector<32x1xf32> to vector<32x512xf32>
    %100 = arith.mulf %96, %99 : vector<32x512xf32>
    %101 = arith.addf %94, %100 : vector<32x512xf32>
    %c607_i32 = arith.constant 607 : i32
    %102 = tpu.dynamic_rotate %44 by %c607_i32 dim 1 : vector<32x640xf32>, i32 -> vector<32x640xf32>
    %103 = vector.extract_strided_slice %102 {offsets = [0, 0], sizes = [32, 512], strides = [1, 1]} : vector<32x640xf32> to vector<32x512xf32>
    %104 = vector.extract_strided_slice %2 {offsets = [8, 0, 0], sizes = [1, 32, 1], strides = [1, 1, 1]} : vector<9x32x1xf32> to vector<1x32x1xf32>
    %105 = vector.shape_cast %104 : vector<1x32x1xf32> to vector<32x1xf32>
    %106 = vector.broadcast %105 : vector<32x1xf32> to vector<32x512xf32>
    %107 = arith.mulf %103, %106 : vector<32x512xf32>
    %108 = arith.addf %101, %107 : vector<32x512xf32>
    %cst_24 = arith.constant 0.000000e+00 : f32
    %109 = vector.shape_cast %29 : vector<1x512xi1> to vector<1x512xi1>
    %110 = vector.broadcast %109 : vector<1x512xi1> to vector<32x512xi1>
    %111 = vector.broadcast %cst_24 : f32 to vector<32x512xf32>
    %112 = arith.select %110, %108, %111 : vector<32x512xi1>, vector<32x512xf32>
    %113 = arith.addf %88, %112 : vector<32x512xf32>
    %114 = vector.extract_strided_slice %113 {offsets = [0, 0], sizes = [16, 512], strides = [1, 1]} : vector<32x512xf32> to vector<16x512xf32>
    %115 = vector.extract_strided_slice %113 {offsets = [16, 0], sizes = [16, 512], strides = [1, 1]} : vector<32x512xf32> to vector<16x512xf32>
    %cst_25 = arith.constant 5.000000e-01 : f32
    %116 = vector.broadcast %cst_25 : f32 to vector<16x512xf32>
    %117 = arith.mulf %116, %115 : vector<16x512xf32>
    %cst_26 = arith.constant 0.707106769 : f32
    %118 = vector.broadcast %cst_26 : f32 to vector<16x512xf32>
    %119 = arith.mulf %115, %118 : vector<16x512xf32>
    %120 = math.erf %119 : vector<16x512xf32>
    %cst_27 = arith.constant 1.000000e+00 : f32
    %121 = vector.broadcast %cst_27 : f32 to vector<16x512xf32>
    %122 = arith.addf %121, %120 : vector<16x512xf32>
    %123 = arith.mulf %117, %122 : vector<16x512xf32>
    %124 = arith.mulf %123, %114 : vector<16x512xf32>
    %cst_28 = arith.constant 5.000000e-01 : f32
    %125 = vector.broadcast %cst_28 : f32 to vector<16x512xf32>
    %126 = arith.mulf %125, %114 : vector<16x512xf32>
    %cst_29 = arith.constant 0.707106769 : f32
    %127 = vector.broadcast %cst_29 : f32 to vector<16x512xf32>
    %128 = arith.mulf %114, %127 : vector<16x512xf32>
    %129 = math.erf %128 : vector<16x512xf32>
    %cst_30 = arith.constant 1.000000e+00 : f32
    %130 = vector.broadcast %cst_30 : f32 to vector<16x512xf32>
    %131 = arith.addf %130, %129 : vector<16x512xf32>
    %132 = arith.mulf %126, %131 : vector<16x512xf32>
    %133 = arith.mulf %132, %115 : vector<16x512xf32>
    %134 = arith.addf %124, %133 : vector<16x512xf32>
    %cst_31 = arith.constant dense<0.000000e+00> : vector<8x512xf32>
    %135 = tpu.matmul %1, %134, %cst_31 {dimension_numbers = #tpu.dot_dimension_numbers<[1], [0], [0], [1], [0, 0, 1, 1], [], []>} : vector<8x16xf32>, vector<16x512xf32>, vector<8x512xf32> -> vector<8x512xf32>
    %136 = vector.broadcast %5 : vector<8x1xf32> to vector<8x512xf32>
    %137 = arith.addf %135, %136 : vector<8x512xf32>
    %c0_32 = arith.constant 0 : index
    %c0_33 = arith.constant 0 : index
    %138 = vector.load %arg10[%c0_32, %c0_33] : memref<8x512xf32, #tpu.memory_space<vmem>>, vector<8x512xf32>
    tpu.vector_store %arg10[%c0_32, %c0_33], %137 {strides = array<i32>} : memref<8x512xf32, #tpu.memory_space<vmem>>, vector<8x512xf32>,
    return
  }
  func.func @transform_0(%arg0: i32) -> (i32, i32) {
    %c1_i32 = arith.constant 1 : i32
    %0 = arith.subi %arg0, %c1_i32 : i32
    %c0_i32 = arith.constant 0 : i32
    %1 = arith.maxsi %0, %c0_i32 : i32
    %c0_i32_0 = arith.constant 0 : i32
    %c0_i32_1 = arith.constant 0 : i32
    return %c0_i32_0, %1 : i32, i32
  }
  func.func @transform_1(%arg0: i32) -> (i32, i32) {
    %c0_i32 = arith.constant 0 : i32
    %c0_i32_0 = arith.constant 0 : i32
    return %c0_i32, %arg0 : i32, i32
  }
  func.func @transform_2(%arg0: i32) -> (i32, i32) {
    %c1_i32 = arith.constant 1 : i32
    %0 = arith.addi %arg0, %c1_i32 : i32
    %c0_i32 = arith.constant 0 : i32
    %1 = arith.minsi %0, %c0_i32 : i32
    %c0_i32_0 = arith.constant 0 : i32
    %c0_i32_1 = arith.constant 0 : i32
    return %c0_i32_0, %1 : i32, i32
  }
  func.func @transform_3(%arg0: i32) -> (i32, i32) {
    %c0_i32 = arith.constant 0 : i32
    %c0_i32_0 = arith.constant 0 : i32
    %c0_i32_1 = arith.constant 0 : i32
    return %c0_i32, %c0_i32_0 : i32, i32
  }
  func.func @transform_4(%arg0: i32) -> (i32, i32) {
    %c0_i32 = arith.constant 0 : i32
    %c0_i32_0 = arith.constant 0 : i32
    %c0_i32_1 = arith.constant 0 : i32
    return %c0_i32, %c0_i32_0 : i32, i32
  }
  func.func @transform_5(%arg0: i32) -> (i32, i32, i32) {
    %c0_i32 = arith.constant 0 : i32
    %c0_i32_0 = arith.constant 0 : i32
    %c0_i32_1 = arith.constant 0 : i32
    %c0_i32_2 = arith.constant 0 : i32
    return %c0_i32, %c0_i32_0, %c0_i32_1 : i32, i32, i32
  }
  func.func @transform_6(%arg0: i32) -> (i32, i32) {
    %c0_i32 = arith.constant 0 : i32
    %c0_i32_0 = arith.constant 0 : i32
    %c0_i32_1 = arith.constant 0 : i32
    return %c0_i32, %c0_i32_0 : i32, i32
  }
  func.func @transform_7(%arg0: i32) -> (i32, i32) {
    %c0_i32 = arith.constant 0 : i32
    %c0_i32_0 = arith.constant 0 : i32
    %c0_i32_1 = arith.constant 0 : i32
    return %c0_i32, %c0_i32_0 : i32, i32
  }
  func.func @transform_8(%arg0: i32) -> (i32, i32) {
    %c0_i32 = arith.constant 0 : i32
    %c0_i32_0 = arith.constant 0 : i32
    %c0_i32_1 = arith.constant 0 : i32
    return %c0_i32, %c0_i32_0 : i32, i32
  }
  func.func @transform_9(%arg0: i32) -> (i32, i32) {
    %c0_i32 = arith.constant 0 : i32
    %c0_i32_0 = arith.constant 0 : i32
    return %c0_i32, %arg0 : i32, i32
  }
}

</mosaic_0001>

<bundles_post_ra>
// kernel: feedforward.1
= control target key start
LH: loop header
LB: loop body
LE: loop exit
PB: predicated region body
PF: predicated region fallthrough
CT: control target
= control target key end

     0   :  { %v2097_v0 = vmov 0   ;;  %v2098_v4 = vmov 0.0   ;;  %vm170_vm0 = vcmask 64512   ;;  %s2099_s21 = smov 16   ;;  %vm585_vm1 = vcmask 130048   ;;  %s2102_s15 = smov 127   ;;  %s4048_s4 = inlined_call_operand.vmem [shape: f32[32,1], index: 4, kind: input, shape index: {}]   ;;  %s4049_s1 = inlined_call_operand.vmem [shape: f32[8,512], index: 1, kind: input, shape index: {}, may-alias: {0,1,2}]   ;;  %s4050_s0 = inlined_call_operand.vmem [shape: f32[8,512], index: 0, kind: input, shape index: {}, may-alias: {0,1,2}]   ;;  %s4051_s3 = inlined_call_operand.vmem [shape: f32[32,8], index: 3, kind: input, shape index: {}]   ;;  %s4052_s2 = inlined_call_operand.vmem [shape: f32[8,512], index: 2, kind: input, shape index: {}, may-alias: {0,1,2}]   ;;  %s4053_s5 = inlined_call_operand.vmem [shape: f32[9,32,1], index: 5, kind: input, shape index: {}]   ;;  %s4054_s6 = inlined_call_operand.vmem [shape: f32[32,1], index: 6, kind: input, shape index: {}]   ;;  %s4055_s8 = inlined_call_operand.vmem [shape: f32[8,1], index: 8, kind: input, shape index: {}]   ;;  %s4056_s7 = inlined_call_operand.vmem [shape: f32[8,16], index: 7, kind: input, shape index: {}]   ;;  %s4057_s9 = inlined_call_operand.vmem [shape: f32[8,512], index: 9, kind: output, shape index: {}]  }
   0x1   :  { %2064 = vset.pattern.permute.xlu1 %v2097_v0  ;;  %v138_v1 = vld [vmem:[%s4048_s4 + $0x8] sm:$0xff]  ;;  %v149_v3 = vld [vmem:[%s4049_s1 + $0x18] sm:$0xff]  ;;  %247 = vmatprep.mubr.f32.mxu0 %v2098_v4  ;;  %v146_v6 = vld [vmem:[%s4049_s1] sm:$0xff]  ;;  %s2103_s16 = smov 97   ;;  %s2104_s17 = smov 113   ;;  %vm642_vm13 = vcmask 261120  }
   0x2   :  { %v147_v2 = vld [vmem:[%s4049_s1 + $0x8] sm:$0xff]  ;;  %157 = vperm.xlu1 %2064, %v138_v1   ;;  %v361_v5 = vld [vmem:[%s4050_s0 + $0x18] sm:$0xff]  ;;  %v148_v7 = vld [vmem:[%s4049_s1 + $0x10] sm:$0xff]  ;;  %302 = vmatprep.subr.mxu1 %v149_v3  ;;  %s2105_s18 = smov 95   ;;  %s2106_s19 = smov 111  }
   0x3   :  { %213 = vmatprep.subr.mxu0 %v147_v2  ;;  %363 = vrot.lane.b32.xlu0 %v361_v5, %s2099_s21  ;;  %v96_v8 = vld [vmem:[%s4051_s3] sm:$0xff]  ;;  %v139_v9 = vld [vmem:[%s4048_s4 + $0x10] sm:$0xff]  ;;  %v2192_v11 = vld [vmem:[%s4051_s3 + $0x8] sm:$0xff] }
   0x4   :  { %214 = vmatpush1.msra.mxu0 %v146_v6  ;;  %303 = vmatpush1.msra.mxu1 %v148_v7  ;;  %v137_v10 = vld [vmem:[%s4048_s4] sm:$0xff]  ;;  %v140_v13 = vld [vmem:[%s4048_s4 + $0x18] sm:$0xff]  ;;  %v2213_v15 = vld [vmem:[%s4051_s3 + $0x10] sm:$0xff] }
   0x5   :  { %336 = vmatprep.mubr.f32.mxu1 %v2098_v4  ;;  %2009 = vmatmul.mubr.msk.f32.vlgmr.msra.gmra.mxu0 %vm170_vm0, %v96_v8  ;;  %v451_v12 = vld [vmem:[%s4052_s2] sm:$0xff]  ;;  %v118_v16 = vld [vmem:[%s4053_s5 + $0x88] sm:$0xff]  ;;  %v119_v17 = vld [vmem:[%s4053_s5 + $0x90] sm:$0xff] }
   0x6   :  { %2013 = vmatmul.mubr.msk.f32.vlgmr.msra.gmra.mxu1 %vm170_vm0, %v96_v8  ;;  %2063 = vset.pattern.permute.xlu0 %v2097_v0  ;;  %v117_v14 = vld [vmem:[%s4053_s5 + $0x80] sm:$0xff]  ;;  %v2230_v18 = vld [vmem:[%s4051_s3 + $0x18] sm:$0xff]  ;;  %v142_v21 = vld [vmem:[%s4054_s6 + $0x8] sm:$0xff] }
   0x7   :  { %162 = vperm.xlu1 %2064, %v139_v9   ;;  %152 = vperm.xlu0 %2063, %v137_v10   ;;  %v120_v19 = vld [vmem:[%s4053_s5 + $0x98] sm:$0xff]  ;;  %v141_v20 = vld [vmem:[%s4054_s6] sm:$0xff]  ;;  %v143_v22 = vld [vmem:[%s4054_s6 + $0x10] sm:$0xff] }
   0x8   :  { %253 = vmatprep.mubr.f32.mxu0 %v2098_v4  ;;  %342 = vmatprep.mubr.f32.mxu1 %v2098_v4  ;;  %v144_v23 = vld [vmem:[%s4054_s6 + $0x18] sm:$0xff]  ;;  %v101_v24 = vld [vmem:[%s4053_s5] sm:$0xff]  ;;  %v102_v25 = vld [vmem:[%s4053_s5 + $0x8] sm:$0xff] }
   0x9   :  { %2010 = vmatmul.mubr.msk.f32.gmra.mxu0 %vm170_vm0, %v2192_v11  ;;  %2045 = vmatprep.subr.mxu1 %v451_v12  ;;  %v103_v26 = vld [vmem:[%s4053_s5 + $0x10] sm:$0xff]  ;;  %v104_v27 = vld [vmem:[%s4053_s5 + $0x18] sm:$0xff]  ;;  %v105_v28 = vld [vmem:[%s4053_s5 + $0x20] sm:$0xff] }
   0xa   :  { %2014 = vmatmul.mubr.msk.f32.gmra.mxu1 %vm170_vm0, %v2192_v11  ;;  %259 = vmatprep.mubr.f32.mxu0 %v2098_v4  ;;  %v106_v29 = vld [vmem:[%s4053_s5 + $0x28] sm:$0xff]  ;;  %v107_v30 = vld [vmem:[%s4053_s5 + $0x30] sm:$0xff]  ;;  %v108_v31 = vld [vmem:[%s4053_s5 + $0x38] sm:$0xff] }
   0xb   :  { %167 = vperm.xlu1 %2064, %v140_v13   ;;  %802 = vperm.xlu0 %2063, %v117_v14   ;;  %v112_v32 = vld [vmem:[%s4053_s5 + $0x58] sm:$0xff]  ;;  %v110_v33 = vld [vmem:[%s4053_s5 + $0x48] sm:$0xff]  ;;  %v111_v34 = vld [vmem:[%s4053_s5 + $0x50] sm:$0xff] }
   0xc   :  { %348 = vmatprep.mubr.f32.mxu1 %v2098_v4  ;;  %2046 = vmatpush3.msra.mxu1 %v451_v12  ;;  %v109_v35 = vld [vmem:[%s4053_s5 + $0x40] sm:$0xff]  ;;  %v128_v36 = vld [vmem:[%s4053_s5 + $0xd8] sm:$0xff]  ;;  %v126_v37 = vld [vmem:[%s4053_s5 + $0xc8] sm:$0xff] }
   0xd   :  { %2011 = vmatmul.mubr.msk.f32.gmra.mxu0 %vm170_vm0, %v2213_v15  ;;  %v132_v38 = vld [vmem:[%s4053_s5 + $0xf8] sm:$0xff]  ;;  %v130_v39 = vld [vmem:[%s4053_s5 + $0xe8] sm:$0xff]  ;;  %v125_v42 = vld [vmem:[%s4053_s5 + $0xc0] sm:$0xff] }
   0xe   :  { %2015 = vmatmul.mubr.msk.f32.gmra.mxu1 %vm170_vm0, %v2213_v15  ;;  %265 = vmatprep.mubr.f32.mxu0 %v2098_v4  ;;  %v114_v40 = vld [vmem:[%s4053_s5 + $0x68] sm:$0xff]  ;;  %v116_v41 = vld [vmem:[%s4053_s5 + $0x78] sm:$0xff]  ;;  %v127_v43 = vld [vmem:[%s4053_s5 + $0xd0] sm:$0xff] }
   0xf   :  { %807 = vperm.xlu1 %2064, %v118_v16   ;;  %812 = vperm.xlu0 %2063, %v119_v17   ;;  %v129_v44 = vld [vmem:[%s4053_s5 + $0xe0] sm:$0xff]  ;;  %v131_v45 = vld [vmem:[%s4053_s5 + $0xf0] sm:$0xff]  ;;  %v134_v46 = vld [vmem:[%s4053_s5 + $0x108] sm:$0xff] }
  0x10   :  { %354 = vmatprep.mubr.f32.mxu1 %v2098_v4  ;;  %v136_v47 = vld [vmem:[%s4053_s5 + $0x118] sm:$0xff]  ;;  %v113_v48 = vld [vmem:[%s4053_s5 + $0x60] sm:$0xff]  ;;  %v115_v49 = vld [vmem:[%s4053_s5 + $0x70] sm:$0xff] }
  0x11   :  { %2012 = vmatmul.mubr.msk.f32.gmra.mxu0 %vm170_vm0, %v2230_v18  ;;  %v122_v50 = vld [vmem:[%s4053_s5 + $0xa8] sm:$0xff]  ;;  %v124_v51 = vld [vmem:[%s4053_s5 + $0xb8] sm:$0xff]  ;;  %v133_v52 = vld [vmem:[%s4053_s5 + $0x100] sm:$0xff] }
  0x12   :  { %2016 = vmatmul.mubr.msk.f32.gmra.mxu1 %vm170_vm0, %v2230_v18  ;;  %2039 = vmatprep.mubr.msk.f32.mxu0 %vm170_vm0, %v96_v8  ;;  %v135_v53 = vld [vmem:[%s4053_s5 + $0x110] sm:$0xff]  ;;  %v121_v54 = vld [vmem:[%s4053_s5 + $0xa0] sm:$0xff] }
  0x13   :  { %817 = vperm.xlu1 %2064, %v120_v19   ;;  %838 = vperm.xlu0 %2063, %v141_v20   ;;  %v123_v55 = vld [vmem:[%s4053_s5 + $0xb0] sm:$0xff]  ;;  %s2100_s5 = smov 96  }
  0x14   :  { %2047 = vmatprep.mubr.msk.f32.mxu1 %vm170_vm0, %v96_v8 }
  0x16   :  { %2048 = vmatmul.mubr.msk.f32.vlgmr.msra.gmra.mxu1 %vm170_vm0, %v2192_v11 }
  0x17   :  { %843 = vperm.xlu1 %2064, %v142_v21   ;;  %848 = vperm.xlu0 %2063, %v143_v22  }
  0x18   :  { %2050 = vmatprep.mubr.msk.f32.mxu1 %vm170_vm0, %v2213_v15 }
  0x1a   :  { %2051 = vmatmul.mubr.msk.f32.gmra.mxu1 %vm170_vm0, %v2230_v18 }
  0x1b   :  { %853 = vperm.xlu1 %2064, %v144_v23   ;;  %931 = vperm.xlu0 %2063, %v101_v24  }
  0x1c   :  { %1982 = vmatprep.mubr.f32.mxu1 %v2098_v4 }
  0x1f   :  { %936 = vperm.xlu1 %2064, %v102_v25   ;;  %941 = vperm.xlu0 %2063, %v103_v26  }
  0x23   :  { %946 = vperm.xlu1 %2064, %v104_v27   ;;  %967 = vperm.xlu0 %2063, %v105_v28  }
  0x27   :  { %972 = vperm.xlu1 %2064, %v106_v29   ;;  %977 = vperm.xlu0 %2063, %v107_v30  }
  0x2b   :  { %982 = vperm.xlu1 %2064, %v108_v31   ;;  %1091 = vperm.xlu0 %2063, %v112_v32  }
  0x2f   :  { %1081 = vperm.xlu1 %2064, %v110_v33   ;;  %1086 = vperm.xlu0 %2063, %v111_v34  }
  0x33   :  { %1076 = vperm.xlu1 %2064, %v109_v35   ;;  %1458 = vperm.xlu0 %2063, %v128_v36  }
  0x37   :  { %1448 = vperm.xlu1 %2064, %v126_v37   ;;  %1551 = vperm.xlu0 %2063, %v132_v38  }
  0x3b   :  { %1541 = vperm.xlu1 %2064, %v130_v39   ;;  %1230 = vperm.xlu0 %2063, %v114_v40  }
  0x3f   :  { %1240 = vperm.xlu1 %2064, %v116_v41   ;;  %1443 = vperm.xlu0 %2063, %v125_v42  }
  0x43   :  { %1453 = vperm.xlu1 %2064, %v127_v43   ;;  %1536 = vperm.xlu0 %2063, %v129_v44  }
  0x47   :  { %1546 = vperm.xlu1 %2064, %v131_v45   ;;  %1650 = vperm.xlu0 %2063, %v134_v46  }
  0x4b   :  { %1660 = vperm.xlu1 %2064, %v136_v47   ;;  %1225 = vperm.xlu0 %2063, %v113_v48  }
  0x4f   :  { %1235 = vperm.xlu1 %2064, %v115_v49   ;;  %1339 = vperm.xlu0 %2063, %v122_v50  }
  0x53   :  { %1349 = vperm.xlu1 %2064, %v124_v51   ;;  %1645 = vperm.xlu0 %2063, %v133_v52  }
  0x57   :  { %1655 = vperm.xlu1 %2064, %v135_v53   ;;  %1334 = vperm.xlu0 %2063, %v121_v54  }
  0x5b   :  { %1344 = vperm.xlu1 %2064, %v123_v55  }
  0x75   :  { %v364_v56 = vpop.permute.xlu0 %363 }
  0x76   :  { %2037 = vmatprep.subr.mxu0 %v364_v56 }
  0x77   :  { %2038 = vmatpush3.msra.mxu0 %v364_v56 }
  0x78   :  { %2040 = vmatmul.mubr.msk.f32.vlgmr.msra.gmra.mxu0 %vm170_vm0, %v2192_v11 }
  0x79   :  { %2042 = vmatprep.mubr.msk.f32.mxu0 %vm170_vm0, %v2213_v15 }
  0x7c   :  { %2043 = vmatmul.mubr.msk.f32.gmra.mxu0 %vm170_vm0, %v2230_v18 }
  0x7d   :  { %1911 = vmatprep.mubr.f32.mxu0 %v2098_v4  ;;  %v2364_v57 = vpop.permute.xlu1 %157 }
  0x82   :  { %v2366_v58 = vpop.permute.xlu1 %162  ;;  %v2368_v59 = vpop.permute.xlu0 %152 }
  0x86   :  { %v2370_v60 = vpop.permute.xlu1 %167  ;;  %v2372_v61 = vpop.permute.xlu0 %802 }
  0x8a   :  { %v2374_v63 = vpop.permute.xlu1 %807  ;;  %v2384_v6 = vpop.permute.xlu0 %812 }
  0x8b   :  { %4161 = vst [vmem:[#allocation3_spill] sm:$0xff] %v2384_v6 }
  0x8e   :  { %v2391_v9 = vpop.permute.xlu1 %817  ;;  %v2403_v15 = vpop.permute.xlu0 %838 }
  0x8f   :  { %4162 = vst [vmem:[#allocation4_spill] sm:$0xff] %v2391_v9 }
  0x92   :  { %v2410_v19 = vpop.permute.xlu1 %843  ;;  %v2422_v24 = vpop.permute.xlu0 %848 }
  0x93   :  { %4166 = vst [vmem:[#allocation8_spill] sm:$0xff] %v2422_v24 }
  0x96   :  { %v2429_v27 = vpop.permute.xlu1 %853  ;;  %v2441_v32 = vpop.permute.xlu0 %931 }
  0x97   :  { %4168 = vst [vmem:[#allocation10_spill] sm:$0xff] %v2429_v27 }
  0x9a   :  { %v2448_v35 = vpop.permute.xlu1 %936  ;;  %v2460_v39 = vpop.permute.xlu0 %941 }
  0x9b   :  { %4174 = vst [vmem:[#allocation16_spill] sm:$0xff] %v2460_v39 }
  0x9e   :  { %v2467_v42 = vpop.permute.xlu1 %946  ;;  %v2477_v46 = vpop.permute.xlu0 %967 }
  0xa2   :  { %v2481_v48 = vpop.permute.xlu1 %972  ;;  %v2487_v51 = vpop.permute.xlu0 %977 }
  0xa3   :  { %4177 = vst [vmem:[#allocation19_spill] sm:$0xff] %v2487_v51 }
  0xa6   :  { %v2490_v52 = vpop.permute.xlu1 %982  ;;  %v2492_v53 = vpop.permute.xlu0 %1091 }
  0xa7   :  { %4178 = vst [vmem:[#allocation20_spill] sm:$0xff] %v2490_v52  ;;  %4179 = vst [vmem:[#allocation21_spill] sm:$0xff] %v2492_v53 }
  0xaa   :  { %v2494_v54 = vpop.permute.xlu1 %1081  ;;  %v2496_v55 = vpop.permute.xlu0 %1086 }
  0xab   :  { %4180 = vst [vmem:[#allocation22_spill] sm:$0xff] %v2496_v55 }
  0xae   :  { %v2498_v56 = vpop.permute.xlu1 %1076 }
  0xc5   :  { %v249_v62 = vpop.f32.mrf.mxu0 }
  0xc6   :  { %v2377_v0 = vadd.f32 %v249_v62, %v2368_v59  ;;  %v338_v1 = vpop.f32.mrf.mxu1  ;;  %v2500_v62 = vpop.permute.xlu0 %1458 }
  0xc7   :  { %v251_v2 = vpop.f32.mrf.mxu0  ;;  %v2387_v7 = vadd.f32 %v338_v1, %v2368_v59  ;;  %4181 = vst [vmem:[#allocation23_spill] sm:$0xff] %v2500_v62  ;;  %v2502_v1 = vpop.permute.xlu1 %1448 }
  0xc8   :  { %4160 = vst [vmem:[#allocation2_spill] sm:$0xff] %v2377_v0  ;;  %v2380_v3 = vadd.f32 %v251_v2, %v2368_v59  ;;  %v340_v4 = vpop.f32.mrf.mxu1  ;;  %553 = vrot.lane.b32.xlu0 %v2377_v0, %s2099_s21  ;;  %4182 = vst [vmem:[#allocation24_spill] sm:$0xff] %v2502_v1 }
  0xc9   :  { %v255_v5 = vpop.f32.mrf.mxu0  ;;  %v2394_v10 = vadd.f32 %v340_v4, %v2368_v59 }
  0xca   :  { %v344_v8 = vpop.f32.mrf.mxu1  ;;  %555 = vrot.lane.b32.xlu1 %v2380_v3, %s2099_s21  ;;  %v2399_v13 = vadd.f32 %v255_v5, %v2364_v57  ;;  %v2504_v2 = vpop.permute.xlu0 %1551 }
  0xcb   :  { %4163 = vst [vmem:[#allocation5_spill] sm:$0xff] %v2394_v10  ;;  %v257_v12 = vpop.f32.mrf.mxu0  ;;  %v2413_v20 = vadd.f32 %v344_v8, %v2364_v57  ;;  %4183 = vst [vmem:[#allocation25_spill] sm:$0xff] %v2504_v2  ;;  %v2506_v4 = vpop.permute.xlu1 %1541 }
  0xcc   :  { %v346_v11 = vpop.f32.mrf.mxu1  ;;  %557 = vrot.lane.b32.xlu0 %v2387_v7, %s2099_s21  ;;  %4164 = vst [vmem:[#allocation6_spill] sm:$0xff] %v2399_v13  ;;  %v2406_v16 = vadd.f32 %v257_v12, %v2364_v57  ;;  %4184 = vst [vmem:[#allocation26_spill] sm:$0xff] %v2506_v4 }
  0xcd   :  { %v261_v18 = vpop.f32.mrf.mxu0  ;;  %v2418_v22 = vadd.f32 %v346_v11, %v2364_v57 }
  0xce   :  { %v350_v14 = vpop.f32.mrf.mxu1  ;;  %559 = vrot.lane.b32.xlu1 %v2394_v10, %s2099_s21  ;;  %v2425_v25 = vadd.f32 %v261_v18, %v2366_v58  ;;  %v2508_v5 = vpop.permute.xlu0 %1230 }
  0xcf   :  { %4165 = vst [vmem:[#allocation7_spill] sm:$0xff] %v2418_v22  ;;  %v263_v23 = vpop.f32.mrf.mxu0  ;;  %v2437_v30 = vadd.f32 %v350_v14, %v2366_v58  ;;  %v2510_v8 = vpop.permute.xlu1 %1240 }
  0xd0   :  { %v352_v17 = vpop.f32.mrf.mxu1  ;;  %561 = vrot.lane.b32.xlu0 %v2399_v13, %s2099_s21  ;;  %4167 = vst [vmem:[#allocation9_spill] sm:$0xff] %v2425_v25  ;;  %v2432_v28 = vadd.f32 %v263_v23, %v2366_v58  ;;  %4185 = vst [vmem:[#allocation27_spill] sm:$0xff] %v2510_v8 }
  0xd1   :  { %v267_v29 = vpop.f32.mrf.mxu0  ;;  %4170 = vst [vmem:[#allocation12_spill] sm:$0xff] %v2437_v30  ;;  %v2444_v33 = vadd.f32 %v352_v17, %v2366_v58 }
  0xd2   :  { %563 = vrot.lane.b32.xlu1 %v2406_v16, %s2099_s21  ;;  %v356_v21 = vpop.f32.mrf.mxu1  ;;  %4169 = vst [vmem:[#allocation11_spill] sm:$0xff] %v2432_v28  ;;  %v2451_v36 = vadd.f32 %v267_v29, %v2370_v60  ;;  %v2512_v11 = vpop.permute.xlu0 %1443 }
  0xd3   :  { %4171 = vst [vmem:[#allocation13_spill] sm:$0xff] %v2444_v33  ;;  %v269_v34 = vpop.f32.mrf.mxu0  ;;  %v2463_v40 = vadd.f32 %v356_v21, %v2370_v60  ;;  %4186 = vst [vmem:[#allocation28_spill] sm:$0xff] %v2512_v11  ;;  %v2514_v12 = vpop.permute.xlu1 %1453 }
  0xd4   :  { %565 = vrot.lane.b32.xlu0 %v2413_v20, %s2099_s21  ;;  %v358_v26 = vpop.f32.mrf.mxu1  ;;  %4172 = vst [vmem:[#allocation14_spill] sm:$0xff] %v2451_v36  ;;  %v2456_v38 = vadd.f32 %v269_v34, %v2370_v60  ;;  %4187 = vst [vmem:[#allocation29_spill] sm:$0xff] %v2514_v12 }
  0xd5   :  { %4175 = vst [vmem:[#allocation17_spill] sm:$0xff] %v2463_v40  ;;  %v2470_v43 = vadd.f32 %v358_v26, %v2370_v60 }
  0xd6   :  { %567 = vrot.lane.b32.xlu1 %v2418_v22, %s2099_s21  ;;  %v2049_v31 = vpop.f32.mrf.mxu1  ;;  %4173 = vst [vmem:[#allocation15_spill] sm:$0xff] %v2456_v38  ;;  %v2516_v14 = vpop.permute.xlu0 %1536 }
  0xd7   :  { %4176 = vst [vmem:[#allocation18_spill] sm:$0xff] %v2470_v43  ;;  %v524_v47 = vadd.f32 %v2049_v31, %v2364_v57  ;;  %4188 = vst [vmem:[#allocation30_spill] sm:$0xff] %v2516_v14  ;;  %v2518_v17 = vpop.permute.xlu1 %1546 }
  0xd8   :  { %569 = vrot.lane.b32.xlu0 %v2425_v25, %s2099_s21  ;;  %v518_v37 = vpop.f32.mrf.mxu1  ;;  %4189 = vst [vmem:[#allocation31_spill] sm:$0xff] %v2518_v17 }
  0xd9   :  { %v519_v44 = vadd.f32 %v518_v37, %v2368_v59 }
  0xda   :  { %571 = vrot.lane.b32.xlu1 %v2432_v28, %s2099_s21  ;;  %v2052_v41 = vpop.f32.mrf.mxu1  ;;  %v2520_v18 = vpop.permute.xlu0 %1650 }
  0xdb   :  { %v534_v50 = vadd.f32 %v2052_v41, %v2370_v60  ;;  %4190 = vst [vmem:[#allocation32_spill] sm:$0xff] %v2520_v18  ;;  %v2522_v21 = vpop.permute.xlu1 %1660 }
  0xdc   :  { %573 = vrot.lane.b32.xlu0 %v2437_v30, %s2099_s21  ;;  %v528_v45 = vpop.f32.mrf.mxu1  ;;  %4191 = vst [vmem:[#allocation33_spill] sm:$0xff] %v2522_v21 }
  0xdd   :  { %v529_v49 = vadd.f32 %v528_v45, %v2366_v58  ;;  %v648_v45 = vlaneseq }
  0xde   :  { %575 = vrot.lane.b32.xlu1 %v2444_v33, %s2099_s21  ;;  %v2524_v23 = vpop.permute.xlu0 %1225 }
  0xdf   :  { %4192 = vst [vmem:[#allocation34_spill] sm:$0xff] %v2524_v23  ;;  %v2526_v26 = vpop.permute.xlu1 %1235 }
  0xe0   :  { %577 = vrot.lane.b32.xlu0 %v2451_v36, %s2099_s21  ;;  %4193 = vst [vmem:[#allocation35_spill] sm:$0xff] %v2526_v26  ;;  %v2543_v26 = vand.u32 127, %v648_v45 }
  0xe2   :  { %579 = vrot.lane.b32.xlu1 %v2456_v38, %s2099_s21  ;;  %v2528_v29 = vpop.permute.xlu0 %1339  ;;  %v2558_v33 = vadd.s32 128, %v2543_v26  ;;  %v2585_v11 = vadd.s32 256, %v2543_v26  ;;  %vm912_vm10 = vcmp.lt.s32.totalorder %v2543_v26, 1  ;;  %vm1057_vm11 = vcmp.lt.s32.totalorder %v2543_v26, 127 }
  0xe3   :  { %4194 = vst [vmem:[#allocation36_spill] sm:$0xff] %v2528_v29  ;;  %v2530_v31 = vpop.permute.xlu1 %1349  ;;  %vm1424_vm0 = vcmp.lt.s32.totalorder %v2543_v26, 97 }
  0xe4   :  { %581 = vrot.lane.b32.xlu0 %v2463_v40, %s2099_s21  ;;  %4195 = vst [vmem:[#allocation37_spill] sm:$0xff] %v2530_v31  ;;  %4200 = vst [vmem:[#allocation42_spill] sm:$0xff] %v2558_v33  ;;  %v713_v36 = vand.u32 15, %v2585_v11 }
  0xe6   :  { %583 = vrot.lane.b32.xlu1 %v2470_v43, %s2099_s21  ;;  %v2532_v34 = vpop.permute.xlu0 %1645  ;;  %vm2643_vm6 = vcmp.eq.s32.totalorder %v713_v36, 15  ;;  %vm2652_vm7 = vcmp.eq.s32.totalorder %v713_v36, 0 }
  0xe7   :  { %4196 = vst [vmem:[#allocation38_spill] sm:$0xff] %v2532_v34  ;;  %v2534_v37 = vpop.permute.xlu1 %1655 }
  0xe8   :  { %622 = vrot.lane.b32.xlu0 %v519_v44, %s2099_s21  ;;  %4197 = vst [vmem:[#allocation39_spill] sm:$0xff] %v2534_v37 }
  0xea   :  { %624 = vrot.lane.b32.xlu1 %v524_v47, %s2099_s21  ;;  %v2536_v41 = vpop.permute.xlu0 %1334 }
  0xeb   :  { %4198 = vst [vmem:[#allocation40_spill] sm:$0xff] %v2536_v41  ;;  %v2538_v44 = vpop.permute.xlu1 %1344  ;;  %v699_v41 = vand.u32 15, %v2543_v26 }
  0xec   :  { %626 = vrot.lane.b32.xlu0 %v529_v49, %s2099_s21  ;;  %4199 = vst [vmem:[#allocation41_spill] sm:$0xff] %v2538_v44 }
  0xed   :  { %vm2563_vm2 = vcmp.eq.s32.totalorder %v699_v41, 15  ;;  %vm2587_vm3 = vcmp.eq.s32.totalorder %v699_v41, 0 }
  0xee   :  { %628 = vrot.lane.b32.xlu1 %v534_v50, %s2099_s21  ;;  %s2101_s21 = smov 1  }
 0x138   :  { %v2041_v49 = vpop.f32.mrf.mxu0 }
 0x139   :  { %v438_v44 = vadd.f32 %v2041_v49, %v2364_v57 }
 0x13a   :  { %v554_v47 = vpop.permute.xlu0 %553  ;;  %v432_v37 = vpop.f32.mrf.mxu0 }
 0x13b   :  { %v433_v17 = vadd.f32 %v432_v37, %v2368_v59 }
 0x13c   :  { %v556_v50 = vpop.permute.xlu1 %555 }
 0x13d   :  { %v2541_v12 = vsel %vm585_vm1, %v554_v47, %v556_v50  ;;  %v2579_v37 = vsel %vm585_vm1, %v433_v17, %v554_v47  ;;  %v2609_v47 = vadd.s32 384, %v2543_v26 }
 0x13e   :  { %1485 = vrot.lane.b32.xlu0 %v2541_v12, %s2100_s5  ;;  %v558_v34 = vpop.permute.xlu0 %557  ;;  %v2606_v41 = vsel %vm2563_vm2, 0.0, %v2579_v37  ;;  %v2719_v27 = vsel %vm2587_vm3, 0.0, %v2579_v37 }
 0x13f   :  { %v2552_v29 = vsel %vm585_vm1, %v556_v50, %v558_v34  ;;  %v706_v50 = vand.u32 15, %v2558_v33  ;;  %4207 = vst [vmem:[#allocation45_spill] sm:$0xff] %v2609_v47  ;;  %v720_v30 = vand.u32 15, %v2609_v47  ;;  %4224 = vst [vmem:[#allocation50_spill] sm:$0xff] %v2719_v27 }
 0x140   :  { %v2548_v31 = vpop.permute.xlu1 %559  ;;  %v2747_v9 = vsel %vm2652_vm7, 0.0, %v2552_v29 }
 0x141   :  { %v2576_v59 = vsel %vm585_vm1, %v558_v34, %v2548_v31  ;;  %vm2615_vm4 = vcmp.eq.s32.totalorder %v706_v50, 15  ;;  %vm2625_vm5 = vcmp.eq.s32.totalorder %v706_v50, 0  ;;  %vm2680_vm8 = vcmp.eq.s32.totalorder %v720_v30, 0  ;;  %4226 = vst [vmem:[#allocation52_spill] sm:$0xff] %v2747_v9 }
 0x142   :  { %1493 = vrot.lane.b32.xlu0 %v2552_v29, %s2100_s5  ;;  %v562_v45 = vpop.permute.xlu0 %561  ;;  %4204 = vst [vmem:[#allocation44_spill] sm:$0xff] %v2576_v59  ;;  %v746_v21 = vsel %vm2615_vm4, 0.0, %v2541_v12  ;;  %vm2689_vm9 = vcmp.eq.s32.totalorder %v720_v30, 15  ;;  %v2733_v52 = vsel %vm2625_vm5, 0.0, %v2541_v12 }
 0x143   :  { %v2561_v25 = vsel %vm585_vm1, %v438_v44, %v562_v45  ;;  %v748_v30 = vsel %vm2689_vm9, 0.0, %v2576_v59  ;;  %4225 = vst [vmem:[#allocation51_spill] sm:$0xff] %v2733_v52 }
 0x144   :  { %4201 = vst [vmem:[#allocation43_spill] sm:$0xff] %v2561_v25  ;;  %v564_v57 = vpop.permute.xlu1 %563  ;;  %v2570_v49 = vsel %vm2563_vm2, 0.0, %v2561_v25  ;;  %v2596_v17 = vsel %vm2587_vm3, 0.0, %v2561_v25 }
 0x145   :  { %874 = vrot.lane.b32.xlu1 %v2570_v49, %s2101_s21  ;;  %v2599_v34 = vsel %vm585_vm1, %v562_v45, %v564_v57 }
 0x146   :  { %1501 = vrot.lane.b32.xlu0 %v2576_v59, %s2100_s5  ;;  %v566_v44 = vpop.permute.xlu0 %565  ;;  %v2623_v0 = vsel %vm2615_vm4, 0.0, %v2599_v34 }
 0x147   :  { %v2630_v13 = vsel %vm585_vm1, %v564_v57, %v566_v44 }
 0x148   :  { %v2591_v43 = vpop.permute.xlu1 %567  ;;  %v2664_v8 = vsel %vm2643_vm6, 0.0, %v2630_v13  ;;  %v2726_v53 = vsel %vm2652_vm7, 0.0, %v2630_v13 }
 0x149   :  { %1019 = vrot.lane.b32.xlu1 %v2596_v17, %s2102_s15  ;;  %v2673_v36 = vsel %vm585_vm1, %v566_v44, %v2591_v43 }
 0x14a   :  { %872 = vrot.lane.b32.xlu0 %v2606_v41, %s2101_s21  ;;  %v2613_v33 = vpop.permute.xlu0 %569  ;;  %4218 = vst [vmem:[#allocation48_spill] sm:$0xff] %v2673_v36  ;;  %v2701_v40 = vsel %vm2689_vm9, 0.0, %v2673_v36 }
 0x14c   :  { %v572_v10 = vpop.permute.xlu1 %571 }
 0x14d   :  { %882 = vrot.lane.b32.xlu1 %v2623_v0, %s2101_s21  ;;  %v2640_v24 = vsel %vm585_vm1, %v2613_v33, %v572_v10 }
 0x14e   :  { %4212 = vst [vmem:[#allocation46_spill] sm:$0xff] %v2640_v24  ;;  %880 = vrot.lane.b32.xlu0 %v746_v21, %s2101_s21  ;;  %v574_v50 = vpop.permute.xlu0 %573  ;;  %v2650_v57 = vsel %vm2625_vm5, 0.0, %v2640_v24 }
 0x14f   :  { %v2657_v47 = vsel %vm585_vm1, %v572_v10, %v574_v50  ;;  %v747_v10 = vsel %vm2643_vm6, 0.0, %v2552_v29 }
 0x150   :  { %4217 = vst [vmem:[#allocation47_spill] sm:$0xff] %v2657_v47  ;;  %v2659_v28 = vpop.permute.xlu1 %575  ;;  %v2669_v39 = vsel %vm2652_vm7, 0.0, %v2657_v47 }
 0x151   :  { %890 = vrot.lane.b32.xlu1 %v2664_v8, %s2101_s21  ;;  %v2686_v62 = vsel %vm585_vm1, %v574_v50, %v2659_v28  ;;  %v2712_v50 = vsel %vm2625_vm5, 0.0, %v2599_v34 }
 0x152   :  { %4221 = vst [vmem:[#allocation49_spill] sm:$0xff] %v2686_v62  ;;  %888 = vrot.lane.b32.xlu0 %v747_v10, %s2101_s21  ;;  %v2696_v2 = vsel %vm2680_vm8, 0.0, %v2686_v62 }
 0x155   :  { %898 = vrot.lane.b32.xlu1 %v2701_v40, %s2101_s21 }
 0x156   :  { %896 = vrot.lane.b32.xlu0 %v748_v30, %s2101_s21 }
 0x159   :  { %1027 = vrot.lane.b32.xlu1 %v2712_v50, %s2102_s15 }
 0x15a   :  { %1017 = vrot.lane.b32.xlu0 %v2719_v27, %s2102_s15  ;;  %v2740_v27 = vsel %vm2680_vm8, 0.0, %v2673_v36 }
 0x15d   :  { %1035 = vrot.lane.b32.xlu1 %v2726_v53, %s2102_s15 }
 0x15e   :  { %1025 = vrot.lane.b32.xlu0 %v2733_v52, %s2102_s15  ;;  %v2756_v52 = vsel %vm2680_vm8, 0.0, %v2576_v59  ;;  %v2777_v59 = vsel %vm2643_vm6, 0.0, %v2657_v47 }
 0x15f   :  { %4227 = vst [vmem:[#allocation53_spill] sm:$0xff] %v2756_v52 }
 0x161   :  { %1043 = vrot.lane.b32.xlu1 %v2740_v27, %s2102_s15 }
 0x162   :  { %1033 = vrot.lane.b32.xlu0 %v2747_v9, %s2102_s15  ;;  %v2769_v9 = vsel %vm2615_vm4, 0.0, %v2640_v24 }
 0x165   :  { %1489 = vrot.lane.b32.xlu1 %v2640_v24, %s2100_s5  ;;  %v2785_v24 = vsel %vm2689_vm9, 0.0, %v2686_v62 }
 0x166   :  { %1041 = vrot.lane.b32.xlu0 %v2756_v52, %s2102_s15 }
 0x169   :  { %1497 = vrot.lane.b32.xlu1 %v2657_v47, %s2100_s5  ;;  %v578_v47 = vpop.permute.xlu0 %577 }
 0x16a   :  { %1392 = vrot.lane.b32.xlu0 %v746_v21, %s2103_s16 }
 0x16d   :  { %1505 = vrot.lane.b32.xlu1 %v2686_v62, %s2100_s5 }
 0x16e   :  { %1400 = vrot.lane.b32.xlu0 %v747_v10, %s2103_s16 }
 0x171   :  { %1396 = vrot.lane.b32.xlu1 %v2769_v9, %s2103_s16 }
 0x172   :  { %1408 = vrot.lane.b32.xlu0 %v748_v30, %s2103_s16 }
 0x175   :  { %1404 = vrot.lane.b32.xlu1 %v2777_v59, %s2103_s16 }
 0x176   :  { %1174 = vrot.lane.b32.xlu0 %v746_v21, %s2104_s17  ;;  %v2044_v21 = vpop.f32.mrf.mxu0 }
 0x177   :  { %v448_v62 = vadd.f32 %v2044_v21, %v2370_v60  ;;  %v582_v21 = vpop.permute.xlu0 %581 }
 0x179   :  { %1412 = vrot.lane.b32.xlu1 %v2785_v24, %s2103_s16 }
 0x17a   :  { %1182 = vrot.lane.b32.xlu0 %v747_v10, %s2104_s17  ;;  %v2803_v10 = vsel %vm585_vm1, %v448_v62, %v578_v47  ;;  %v580_v62 = vpop.permute.xlu1 %579 }
 0x17b   :  { %4228 = vst [vmem:[#allocation54_spill] sm:$0xff] %v2803_v10  ;;  %v2818_v60 = vsel %vm2587_vm3, 0.0, %v2803_v10 }
 0x17d   :  { %1178 = vrot.lane.b32.xlu1 %v2769_v9, %s2104_s17 }
 0x17e   :  { %1190 = vrot.lane.b32.xlu0 %v748_v30, %s2104_s17  ;;  %v760_v30 = vsel %vm2563_vm2, 0.0, %v2803_v10 }
 0x181   :  { %1186 = vrot.lane.b32.xlu1 %v2777_v59, %s2104_s17 }
 0x182   :  { %1479 = vrot.lane.b32.xlu0 %v2561_v25, %s2100_s5 }
 0x185   :  { %1194 = vrot.lane.b32.xlu1 %v2785_v24, %s2104_s17 }
 0x186   :  { %1168 = vrot.lane.b32.xlu0 %v2570_v49, %s2104_s17 }
 0x189   :  { %1483 = vrot.lane.b32.xlu1 %v2803_v10, %s2100_s5  ;;  %v2838_v10 = vsel %vm585_vm1, %v580_v62, %v582_v21 }
 0x18a   :  { %1386 = vrot.lane.b32.xlu0 %v2570_v49, %s2103_s16  ;;  %v2831_v49 = vsel %vm585_vm1, %v578_v47, %v580_v62  ;;  %4230 = vst [vmem:[#allocation56_spill] sm:$0xff] %v2838_v10  ;;  %v2903_v38 = vsel %vm2652_vm7, 0.0, %v2838_v10 }
 0x18b   :  { %4229 = vst [vmem:[#allocation55_spill] sm:$0xff] %v2831_v49  ;;  %v761_v62 = vsel %vm2615_vm4, 0.0, %v2831_v49  ;;  %vm1626_vm4 = vcmp.lt.s32.totalorder %v2543_v26, 95 }
 0x18d   :  { %878 = vrot.lane.b32.xlu1 %v760_v30, %s2101_s21 }
 0x18e   :  { %1487 = vrot.lane.b32.xlu0 %v2599_v34, %s2100_s5 }
 0x191   :  { %1023 = vrot.lane.b32.xlu1 %v2818_v60, %s2102_s15 }
 0x192   :  { %1495 = vrot.lane.b32.xlu0 %v2630_v13, %s2100_s5 }
 0x195   :  { %1172 = vrot.lane.b32.xlu1 %v760_v30, %s2104_s17 }
 0x196   :  { %1503 = vrot.lane.b32.xlu0 %v2673_v36, %s2100_s5  ;;  %v2840_v36 = vpop.permute.xlu1 %583 }
 0x197   :  { %v2848_v47 = vsel %vm585_vm1, %v582_v21, %v2840_v36  ;;  %v762_v21 = vsel %vm2643_vm6, 0.0, %v2838_v10  ;;  %vm1315_vm6 = vcmp.lt.s32.totalorder %v2543_v26, 111 }
 0x198   :  { %4231 = vst [vmem:[#allocation57_spill] sm:$0xff] %v2848_v47  ;;  %v2877_v45 = vsel %vm2689_vm9, 0.0, %v2848_v47 }
 0x199   :  { %1390 = vrot.lane.b32.xlu1 %v760_v30, %s2103_s16  ;;  %v2852_v30 = vpop.permute.xlu0 %622 }
 0x19a   :  { %1394 = vrot.lane.b32.xlu0 %v2623_v0, %s2103_s16  ;;  %v2867_v52 = vpop.permute.xlu1 %624 }
 0x19d   :  { %1491 = vrot.lane.b32.xlu1 %v2831_v49, %s2100_s5  ;;  %v2862_v25 = vpop.permute.xlu0 %626 }
 0x19e   :  { %1402 = vrot.lane.b32.xlu0 %v2664_v8, %s2103_s16  ;;  %v2883_v55 = vpop.permute.xlu1 %628 }
 0x1a1   :  { %1499 = vrot.lane.b32.xlu1 %v2838_v10, %s2100_s5 }
 0x1a2   :  { %1410 = vrot.lane.b32.xlu0 %v2701_v40, %s2103_s16 }
 0x1a5   :  { %1507 = vrot.lane.b32.xlu1 %v2848_v47, %s2100_s5 }
 0x1a6   :  { %1176 = vrot.lane.b32.xlu0 %v2623_v0, %s2104_s17 }
 0x1a9   :  { %886 = vrot.lane.b32.xlu1 %v761_v62, %s2101_s21 }
 0x1aa   :  { %1184 = vrot.lane.b32.xlu0 %v2664_v8, %s2104_s17 }
 0x1ad   :  { %894 = vrot.lane.b32.xlu1 %v762_v21, %s2101_s21 }
 0x1ae   :  { %1192 = vrot.lane.b32.xlu0 %v2701_v40, %s2104_s17  ;;  %v2890_v40 = vsel %vm2625_vm5, 0.0, %v2831_v49 }
 0x1b0   :  { %v2872_v0 = vpop.permute.xlu0 %1485 }
 0x1b1   :  { %4232 = vst [vmem:[#allocation58_spill] sm:$0xff] %v2872_v0  ;;  %902 = vrot.lane.b32.xlu1 %v2877_v45, %s2101_s21 }
 0x1b2   :  { %1596 = vrot.lane.b32.xlu0 %v2712_v50, %s2105_s18 }
 0x1b4   :  { %v2885_v8 = vpop.permute.xlu0 %1493 }
 0x1b5   :  { %4233 = vst [vmem:[#allocation59_spill] sm:$0xff] %v2885_v8  ;;  %1031 = vrot.lane.b32.xlu1 %v2890_v40, %s2102_s15  ;;  %v442_v8 = vpop.f32.mrf.mxu0 }
 0x1b6   :  { %1604 = vrot.lane.b32.xlu0 %v2726_v53, %s2105_s18  ;;  %v443_v49 = vadd.f32 %v442_v8, %v2366_v58 }
 0x1b7   :  { %v2896_v44 = vpop.permute.xlu1 %874 }
 0x1b8   :  { %v2898_v0 = vpop.permute.xlu0 %1501  ;;  %v2923_v6 = vsel %vm585_vm1, %v443_v49, %v2613_v33 }
 0x1b9   :  { %4234 = vst [vmem:[#allocation60_spill] sm:$0xff] %v2898_v0  ;;  %1039 = vrot.lane.b32.xlu1 %v2903_v38, %s2102_s15  ;;  %v2917_v0 = vsel %vm2680_vm8, 0.0, %v2848_v47  ;;  %4237 = vst [vmem:[#allocation63_spill] sm:$0xff] %v2923_v6  ;;  %v2933_v51 = vsel %vm2563_vm2, 0.0, %v2923_v6  ;;  %vm1517_vm2 = vcmp.lt.s32.totalorder %v2543_v26, 96 }
 0x1ba   :  { %1612 = vrot.lane.b32.xlu0 %v2740_v27, %s2105_s18 }
 0x1bb   :  { %v2909_v22 = vpop.permute.xlu1 %1019 }
 0x1bc   :  { %4235 = vst [vmem:[#allocation61_spill] sm:$0xff] %v2909_v22  ;;  %v2912_v18 = vpop.permute.xlu0 %872 }
 0x1bd   :  { %4236 = vst [vmem:[#allocation62_spill] sm:$0xff] %v2912_v18  ;;  %1047 = vrot.lane.b32.xlu1 %v2917_v0, %s2102_s15 }
 0x1be   :  { %1285 = vrot.lane.b32.xlu0 %v2712_v50, %s2106_s19  ;;  %v2945_v50 = vsel %vm2587_vm3, 0.0, %v2923_v6  ;;  %vm1206_vm3 = vcmp.lt.s32.totalorder %v2543_v26, 113 }
 0x1bf   :  { %v2927_v22 = vpop.permute.xlu1 %882  ;;  %4240 = vst [vmem:[#allocation66_spill] sm:$0xff] %v2945_v50 }
 0x1c0   :  { %v881_v58 = vpop.permute.xlu0 %880 }
 0x1c1   :  { %1398 = vrot.lane.b32.xlu1 %v761_v62, %s2103_s16 }
 0x1c2   :  { %876 = vrot.lane.b32.xlu0 %v2933_v51, %s2101_s21 }
 0x1c3   :  { %v2937_v8 = vpop.permute.xlu1 %890 }
 0x1c4   :  { %4238 = vst [vmem:[#allocation64_spill] sm:$0xff] %v2937_v8  ;;  %v2939_v33 = vpop.permute.xlu0 %888 }
 0x1c5   :  { %4239 = vst [vmem:[#allocation65_spill] sm:$0xff] %v2939_v33  ;;  %1406 = vrot.lane.b32.xlu1 %v762_v21, %s2103_s16 }
 0x1c6   :  { %1021 = vrot.lane.b32.xlu0 %v2945_v50, %s2102_s15 }
 0x1c7   :  { %v2949_v23 = vpop.permute.xlu1 %898 }
 0x1c8   :  { %4241 = vst [vmem:[#allocation67_spill] sm:$0xff] %v2949_v23  ;;  %v2951_v49 = vpop.permute.xlu0 %896  ;;  %v918_v23 = vsel %vm912_vm10, %v2927_v22, %v2937_v8 }
 0x1c9   :  { %4242 = vst [vmem:[#allocation68_spill] sm:$0xff] %v2951_v49  ;;  %1414 = vrot.lane.b32.xlu1 %v2877_v45, %s2103_s16 }
 0x1ca   :  { %884 = vrot.lane.b32.xlu0 %v2769_v9, %s2101_s21  ;;  %v921_v9 = vsel %vm912_vm10, %v2912_v18, %v881_v58  ;;  %v917_v18 = vsel %vm912_vm10, %v881_v58, %v2939_v33 }
 0x1cb   :  { %v2957_v47 = vpop.permute.xlu1 %1027  ;;  %v950_v10 = vmul.f32 %v2441_v32, %v921_v9 }
 0x1cc   :  { %v2960_v14 = vpop.permute.xlu0 %1017 }
 0x1cd   :  { %4243 = vst [vmem:[#allocation69_spill] sm:$0xff] %v2960_v14  ;;  %1180 = vrot.lane.b32.xlu1 %v761_v62, %s2104_s17  ;;  %v955_v14 = vmul.f32 %v2448_v35, %v918_v23  ;;  %v676_v62 = vand.u32 255, %v2585_v11  ;;  %v826_v11 = vmul.f32 %v2374_v63, %v2413_v20 }
 0x1ce   :  { %892 = vrot.lane.b32.xlu0 %v2777_v59, %s2101_s21  ;;  %v991_v59 = vmul.f32 %v2481_v48, %v2630_v13 }
 0x1cf   :  { %v2972_v49 = vpop.permute.xlu1 %1035  ;;  %vm3006_vm12 = vcmp.ge.s32.totalorder %v676_v62, 16 }
 0x1d0   :  { %v2974_v50 = vpop.permute.xlu0 %1025  ;;  %v1007_v58 = vadd.f32 %v991_v59, %v955_v14 }
 0x1d1   :  { %4244 = vst [vmem:[#allocation70_spill] sm:$0xff] %v2974_v50  ;;  %1188 = vrot.lane.b32.xlu1 %v762_v21, %s2104_s17  ;;  %v821_v21 = vmul.f32 %v2372_v61, %v2380_v3  ;;  %v4323_v3 = vld [vmem:[#allocation61_spill] sm:$0xff] }
 0x1d2   :  { %900 = vrot.lane.b32.xlu0 %v2785_v24, %s2101_s21  ;;  %v986_v24 = vmul.f32 %v2477_v46, %v2541_v12  ;;  %v951_v12 = vmul.f32 %v2441_v32, %v917_v18  ;;  %v822_v18 = vmul.f32 %v2372_v61, %v2387_v7 }
 0x1d3   :  { %v2988_v8 = vpop.permute.xlu1 %1043 }
 0x1d4   :  { %4245 = vst [vmem:[#allocation71_spill] sm:$0xff] %v2988_v8  ;;  %v1063_v13 = vsel %vm1057_vm11, %v2972_v49, %v2988_v8  ;;  %v1034_v23 = vpop.permute.xlu0 %1033  ;;  %v1002_v20 = vadd.f32 %v986_v24, %v950_v10 }
 0x1d5   :  { %v1100_v9 = vmul.f32 %v2494_v54, %v1063_v13  ;;  %v1066_v33 = vsel %vm1057_vm11, %v2974_v50, %v1034_v23  ;;  %1196 = vrot.lane.b32.xlu1 %v2877_v45, %s2104_s17  ;;  %v857_v13 = vadd.f32 %v2403_v15, %v821_v21  ;;  %v862_v50 = vadd.f32 %v2410_v19, %v826_v11 }
 0x1d6   :  { %v1095_v8 = vmul.f32 %v2498_v56, %v1066_v33  ;;  %1029 = vrot.lane.b32.xlu0 %v2650_v57, %s2102_s15  ;;  %v987_v45 = vmul.f32 %v2477_v46, %v2552_v29 }
 0x1d7   :  { %v1116_v14 = vadd.f32 %v1100_v9, %v1007_v58  ;;  %v3014_v59 = vpop.permute.xlu1 %1489  ;;  %v694_v58 = vadd.s32 512, %v2543_v26  ;;  %v858_v9 = vadd.f32 %v2403_v15, %v822_v18 }
 0x1d8   :  { %4248 = vst [vmem:[#allocation72_spill] sm:$0xff] %v3014_v59  ;;  %v1111_v62 = vadd.f32 %v1095_v8, %v1002_v20  ;;  %v3020_v6 = vpop.permute.xlu0 %1041  ;;  %v1003_v21 = vadd.f32 %v987_v45, %v951_v12  ;;  %v639_v20 = vsel %vm585_vm1, %v2591_v43, %v2867_v52 }
 0x1d9   :  { %v1062_v10 = vsel %vm1057_vm11, %v1034_v23, %v3020_v6  ;;  %1600 = vrot.lane.b32.xlu1 %v2890_v40, %s2105_s18  ;;  %v1140_v33 = vsel %vm3006_vm12, %v1116_v14, 0.0  ;;  %v727_v45 = vand.u32 15, %v694_v58 }
 0x1da   :  { %v1096_v11 = vmul.f32 %v2498_v56, %v1062_v10  ;;  %1037 = vrot.lane.b32.xlu0 %v2669_v39, %s2102_s15  ;;  %v3034_v29 = vadd.f32 %v1111_v62, %v857_v13  ;;  %v3036_v8 = vadd.f32 %v1140_v33, %v862_v50  ;;  %v644_v62 = vsel %vm642_vm13, %v639_v20, 0.0 }
 0x1db   :  { %v3038_v7 = vpop.permute.xlu1 %1497  ;;  %vm3067_vm14 = vcmp.eq.s32.totalorder %v727_v45, 15  ;;  %vm3084_vm15 = vcmp.eq.s32.totalorder %v727_v45, 0  ;;  %v638_v20 = vsel %vm585_vm1, %v2548_v31, %v2852_v30 }
 0x1dc   :  { %4249 = vst [vmem:[#allocation73_spill] sm:$0xff] %v3034_v29  ;;  %4250 = vst [vmem:[#allocation74_spill] sm:$0xff] %v3038_v7  ;;  %v1112_v24 = vadd.f32 %v1096_v11, %v1003_v21  ;;  %v3040_v23 = vpop.permute.xlu0 %1392  ;;  %v754_v10 = vsel %vm3067_vm14, 0.0, %v644_v62  ;;  %v3092_v58 = vsel %vm3084_vm15, 0.0, %v644_v62 }
 0x1dd   :  { %4251 = vst [vmem:[#allocation75_spill] sm:$0xff] %v3040_v23  ;;  %1608 = vrot.lane.b32.xlu1 %v2903_v38, %s2105_s18 }
 0x1de   :  { %v1136_v50 = vsel %vm3006_vm12, %v1112_v24, 0.0  ;;  %1045 = vrot.lane.b32.xlu0 %v2696_v2, %s2102_s15  ;;  %v922_v24 = vsel %vm912_vm10, %v2896_v44, %v2927_v22 }
 0x1df   :  { %v3053_v12 = vpop.permute.xlu1 %1505  ;;  %v3055_v14 = vadd.f32 %v1136_v50, %v858_v9  ;;  %v641_v9 = vsel %vm585_vm1, %v2840_v36, %v2883_v55  ;;  %v954_v22 = vmul.f32 %v2448_v35, %v922_v24 }
 0x1e0   :  { %4252 = vst [vmem:[#allocation76_spill] sm:$0xff] %v3053_v12  ;;  %v3057_v13 = vpop.permute.xlu0 %1400  ;;  %v646_v45 = vsel %vm642_vm13, %v641_v9, 0.0 }
 0x1e1   :  { %4253 = vst [vmem:[#allocation77_spill] sm:$0xff] %v3055_v14  ;;  %4254 = vst [vmem:[#allocation78_spill] sm:$0xff] %v3057_v13  ;;  %1616 = vrot.lane.b32.xlu1 %v2917_v0, %s2105_s18  ;;  %v764_v31 = vsel %vm3067_vm14, 0.0, %v646_v45  ;;  %v799_v14 = vsel %vm3084_vm15, 0.0, %v646_v45  ;;  %v825_v13 = vmul.f32 %v2374_v63, %v2406_v16 }
 0x1e2   :  { %1511 = vrot.lane.b32.xlu0 %v644_v62, %s2100_s5 }
 0x1e3   :  { %v3063_v43 = vpop.permute.xlu1 %1396 }
 0x1e4   :  { %4255 = vst [vmem:[#allocation79_spill] sm:$0xff] %v3063_v43  ;;  %v3065_v52 = vpop.permute.xlu0 %1408 }
 0x1e5   :  { %1289 = vrot.lane.b32.xlu1 %v2890_v40, %s2106_s19 }
 0x1e6   :  { %1418 = vrot.lane.b32.xlu0 %v754_v10, %s2103_s16 }
 0x1e7   :  { %v3076_v33 = vpop.permute.xlu1 %1404 }
 0x1e8   :  { %4258 = vst [vmem:[#allocation80_spill] sm:$0xff] %v3076_v33  ;;  %v3078_v21 = vpop.permute.xlu0 %1174 }
 0x1e9   :  { %4259 = vst [vmem:[#allocation81_spill] sm:$0xff] %v3078_v21  ;;  %906 = vrot.lane.b32.xlu1 %v754_v10, %s2101_s21 }
 0x1ea   :  { %1200 = vrot.lane.b32.xlu0 %v754_v10, %s2104_s17  ;;  %v643_v10 = vsel %vm642_vm13, %v638_v20, 0.0 }
 0x1eb   :  { %v3082_v11 = vpop.permute.xlu1 %1412  ;;  %v749_v30 = vsel %vm3067_vm14, 0.0, %v643_v10 }
 0x1ec   :  { %4260 = vst [vmem:[#allocation82_spill] sm:$0xff] %v3082_v11  ;;  %v3088_v40 = vpop.permute.xlu0 %1182  ;;  %v4280_v11 = vld [vmem:[#allocation4_spill] sm:$0xff] }
 0x1ed   :  { %4263 = vst [vmem:[#allocation83_spill] sm:$0xff] %v3088_v40  ;;  %1051 = vrot.lane.b32.xlu1 %v3092_v58, %s2102_s15 }
 0x1ee   :  { %1620 = vrot.lane.b32.xlu0 %v3092_v58, %s2105_s18 }
 0x1ef   :  { %v3104_v50 = vpop.permute.xlu1 %1178 }
 0x1f0   :  { %4264 = vst [vmem:[#allocation84_spill] sm:$0xff] %v3104_v50  ;;  %v3107_v62 = vpop.permute.xlu0 %1190  ;;  %v3131_v50 = vsel %vm3084_vm15, 0.0, %v643_v10 }
 0x1f1   :  { %4265 = vst [vmem:[#allocation85_spill] sm:$0xff] %v3107_v62  ;;  %1515 = vrot.lane.b32.xlu1 %v646_v45, %s2100_s5  ;;  %v640_v45 = vsel %vm585_vm1, %v2659_v28, %v2862_v25 }
 0x1f2   :  { %1509 = vrot.lane.b32.xlu0 %v643_v10, %s2100_s5  ;;  %v645_v10 = vsel %vm642_vm13, %v640_v45, 0.0 }
 0x1f3   :  { %v3112_v36 = vpop.permute.xlu1 %1186  ;;  %v759_v40 = vsel %vm3067_vm14, 0.0, %v645_v10 }
 0x1f4   :  { %4266 = vst [vmem:[#allocation86_spill] sm:$0xff] %v3112_v36  ;;  %v3114_v55 = vpop.permute.xlu0 %1479 }
 0x1f5   :  { %4267 = vst [vmem:[#allocation87_spill] sm:$0xff] %v3114_v55  ;;  %910 = vrot.lane.b32.xlu1 %v764_v31, %s2101_s21 }
 0x1f6   :  { %904 = vrot.lane.b32.xlu0 %v749_v30, %s2101_s21 }
 0x1f7   :  { %v3122_v9 = vpop.permute.xlu1 %1194 }
 0x1f8   :  { %4268 = vst [vmem:[#allocation88_spill] sm:$0xff] %v3122_v9  ;;  %v3124_v20 = vpop.permute.xlu0 %1168 }
 0x1f9   :  { %1055 = vrot.lane.b32.xlu1 %v799_v14, %s2102_s15 }
 0x1fa   :  { %1049 = vrot.lane.b32.xlu0 %v3131_v50, %s2102_s15 }
 0x1fb   :  { %v3135_v36 = vpop.permute.xlu1 %1483 }
 0x1fc   :  { %v3137_v29 = vpop.permute.xlu0 %1386 }
 0x1fd   :  { %4269 = vst [vmem:[#allocation89_spill] sm:$0xff] %v3137_v29  ;;  %1422 = vrot.lane.b32.xlu1 %v764_v31, %s2103_s16 }
 0x1fe   :  { %1416 = vrot.lane.b32.xlu0 %v749_v30, %s2103_s16 }
 0x1ff   :  { %v3144_v9 = vpop.permute.xlu1 %878 }
 0x200   :  { %v3146_v59 = vpop.permute.xlu0 %1487 }
 0x201   :  { %4270 = vst [vmem:[#allocation90_spill] sm:$0xff] %v3146_v59  ;;  %1204 = vrot.lane.b32.xlu1 %v764_v31, %s2104_s17  ;;  %v3166_v31 = vsel %vm3084_vm15, 0.0, %v645_v10 }
 0x202   :  { %1198 = vrot.lane.b32.xlu0 %v749_v30, %s2104_s17 }
 0x203   :  { %v3151_v7 = vpop.permute.xlu1 %1023 }
 0x204   :  { %v3153_v21 = vpop.permute.xlu0 %1495 }
 0x205   :  { %1624 = vrot.lane.b32.xlu1 %v799_v14, %s2105_s18 }
 0x206   :  { %908 = vrot.lane.b32.xlu0 %v759_v40, %s2101_s21 }
 0x207   :  { %v3159_v25 = vpop.permute.xlu1 %1172 }
 0x208   :  { %v3161_v28 = vpop.permute.xlu0 %1503 }
 0x209   :  { %4271 = vst [vmem:[#allocation91_spill] sm:$0xff] %v3161_v28  ;;  %1513 = vrot.lane.b32.xlu1 %v645_v10, %s2100_s5 }
 0x20a   :  { %1053 = vrot.lane.b32.xlu0 %v3166_v31, %s2102_s15 }
 0x20b   :  { %v3170_v30 = vpop.permute.xlu1 %1390 }
 0x20c   :  { %v3172_v45 = vpop.permute.xlu0 %1394 }
 0x20d   :  { %4272 = vst [vmem:[#allocation92_spill] sm:$0xff] %v3172_v45  ;;  %1420 = vrot.lane.b32.xlu1 %v759_v40, %s2103_s16 }
 0x20e   :  { %1293 = vrot.lane.b32.xlu0 %v2726_v53, %s2106_s19  ;;  %v1067_v53 = vsel %vm1057_vm11, %v2957_v47, %v2972_v49 }
 0x20f   :  { %v3177_v18 = vpop.permute.xlu1 %1491  ;;  %v1099_v49 = vmul.f32 %v2494_v54, %v1067_v53  ;;  %v861_v53 = vadd.f32 %v2410_v19, %v825_v13 }
 0x210   :  { %v1403_v43 = vpop.permute.xlu0 %1402 }
 0x211   :  { %v1434_v10 = vsel %vm1424_vm0, %v3172_v45, %v1403_v43  ;;  %1202 = vrot.lane.b32.xlu1 %v759_v40, %s2104_s17 }
 0x212   :  { %1301 = vrot.lane.b32.xlu0 %v2740_v27, %s2106_s19  ;;  %v990_v27 = vmul.f32 %v2481_v48, %v2599_v34 }
 0x213   :  { %v3195_v33 = vpop.permute.xlu1 %1499 }
 0x214   :  { %v3202_v23 = vsel %vm1517_vm2, %v3177_v18, %v3195_v33  ;;  %v3204_v40 = vpop.permute.xlu0 %1410  ;;  %v1006_v55 = vadd.f32 %v990_v27, %v954_v22 }
 0x215   :  { %4273 = vst [vmem:[#allocation93_spill] sm:$0xff] %v3204_v40  ;;  %1297 = vrot.lane.b32.xlu1 %v2903_v38, %s2106_s19 }
 0x216   :  { %1309 = vrot.lane.b32.xlu0 %v3092_v58, %s2106_s19  ;;  %v1115_v38 = vadd.f32 %v1099_v49, %v1006_v55 }
 0x217   :  { %v3213_v24 = vpop.permute.xlu1 %1507 }
 0x218   :  { %4274 = vst [vmem:[#allocation94_spill] sm:$0xff] %v3213_v24  ;;  %v3217_v29 = vpop.permute.xlu0 %1176  ;;  %v1155_v22 = vadd.f32 %v1115_v38, %v861_v53 }
 0x219   :  { %1305 = vrot.lane.b32.xlu1 %v2917_v0, %s2106_s19 }
 0x21a   :  { %1166 = vrot.lane.b32.xlu0 %v2606_v41, %s2104_s17 }
 0x21b   :  { %v887_v34 = vpop.permute.xlu1 %886 }
 0x21c   :  { %v1185_v58 = vpop.permute.xlu0 %1184 }
 0x21d   :  { %v1216_v16 = vsel %vm1206_vm3, %v3217_v29, %v1185_v58  ;;  %1313 = vrot.lane.b32.xlu1 %v799_v14, %s2106_s19 }
 0x21e   :  { %v1248_v27 = vmul.f32 %v2508_v5, %v1216_v16  ;;  %1277 = vrot.lane.b32.xlu0 %v2596_v17, %s2106_s19 }
 0x21f   :  { %v895_v0 = vpop.permute.xlu1 %894 }
 0x220   :  { %v3232_v55 = vadd.f32 %v1248_v27, %v1155_v22  ;;  %v920_v13 = vsel %vm912_vm10, %v887_v34, %v895_v0  ;;  %v3236_v49 = vpop.permute.xlu0 %1192 }
 0x221   :  { %v1212_v45 = vsel %vm1206_vm3, %v1185_v58, %v3236_v49  ;;  %1170 = vrot.lane.b32.xlu1 %v2933_v51, %s2104_s17  ;;  %v1527_v58 = vsel %vm1517_vm2, %v3146_v59, %v3153_v21 }
 0x222   :  { %4275 = vst [vmem:[#allocation95_spill] sm:$0xff] %v3232_v55  ;;  %v1249_v14 = vmul.f32 %v2508_v5, %v1212_v45  ;;  %1384 = vrot.lane.b32.xlu0 %v2606_v41, %s2103_s16  ;;  %v1466_v41 = vmul.f32 %v2502_v1, %v1434_v10  ;;  %v1430_v45 = vsel %vm1424_vm0, %v1403_v43, %v3204_v40  ;;  %v4279_v55 = vld [vmem:[#allocation15_spill] sm:$0xff] }
 0x223   :  { %v903_v38 = vpop.permute.xlu1 %902  ;;  %v1523_v10 = vsel %vm1517_vm2, %v3153_v21, %v3161_v28  ;;  %v1467_v59 = vmul.f32 %v2502_v1, %v1430_v45  ;;  %v833_v21 = vmul.f32 %v4280_v11, %v4279_v55  ;;  %v4281_v28 = vld [vmem:[#allocation55_spill] sm:$0xff]  ;;  %v4290_v1 = vld [vmem:[#allocation17_spill] sm:$0xff] }
 0x224   :  { %v3247_v53 = vadd.f32 %v1249_v14, %v3036_v8  ;;  %v3251_v16 = vsel %vm912_vm10, %v895_v0, %v903_v38  ;;  %v3253_v22 = vpop.permute.xlu0 %1596  ;;  %v924_v8 = vsel %vm912_vm10, %v3144_v9, %v887_v34  ;;  %v1559_v0 = vmul.f32 %v2506_v4, %v1527_v58  ;;  %v4286_v55 = vld [vmem:[#allocation63_spill] sm:$0xff] }
 0x225   :  { %4277 = vst [vmem:[#allocation97_spill] sm:$0xff] %v3253_v22  ;;  %1281 = vrot.lane.b32.xlu1 %v2818_v60, %s2106_s19  ;;  %v962_v34 = vmul.f32 %v2467_v42, %v924_v8  ;;  %v4282_v8 = vld [vmem:[#allocation20_spill] sm:$0xff] }
 0x226   :  { %4276 = vst [vmem:[#allocation96_spill] sm:$0xff] %v3247_v53  ;;  %1477 = vrot.lane.b32.xlu0 %v2579_v37, %s2100_s5  ;;  %v1575_v43 = vadd.f32 %v1559_v0, %v1466_v41  ;;  %v4278_v53 = vld [vmem:[#allocation32_spill] sm:$0xff]  ;;  %v998_v40 = vmul.f32 %v4282_v8, %v4281_v28  ;;  %v4285_v0 = vld [vmem:[#allocation21_spill] sm:$0xff] }
 0x227   :  { %v3271_v27 = vpop.permute.xlu1 %1031 }
 0x228   :  { %v1605_v14 = vpop.permute.xlu0 %1604  ;;  %v1014_v45 = vadd.f32 %v998_v40, %v962_v34  ;;  %v4289_v40 = vld [vmem:[#allocation56_spill] sm:$0xff] }
 0x229   :  { %v1636_v38 = vsel %vm1626_vm4, %v3253_v22, %v1605_v14  ;;  %1388 = vrot.lane.b32.xlu1 %v2933_v51, %s2103_s16  ;;  %v1560_v22 = vmul.f32 %v2506_v4, %v1523_v10  ;;  %v4288_v4 = vld [vmem:[#allocation10_spill] sm:$0xff] }
 0x22a   :  { %v1668_v58 = vmul.f32 %v4278_v53, %v1636_v38  ;;  %1588 = vrot.lane.b32.xlu0 %v2596_v17, %s2105_s18  ;;  %v963_v17 = vmul.f32 %v2467_v42, %v920_v13  ;;  %v999_v13 = vmul.f32 %v4282_v8, %v4289_v40 }
 0x22b   :  { %v1040_v12 = vpop.permute.xlu1 %1039  ;;  %v1576_v10 = vadd.f32 %v1560_v22, %v1467_v59 }
 0x22c   :  { %v3293_v62 = vadd.f32 %v1668_v58, %v1575_v43  ;;  %v1069_v51 = vsel %vm1057_vm11, %v3271_v27, %v1040_v12  ;;  %v3298_v41 = vpop.permute.xlu0 %1612  ;;  %v4287_v58 = vld [vmem:[#allocation51_spill] sm:$0xff] }
 0x22d   :  { %4284 = vst [vmem:[#allocation4_spill] sm:$0xff] %v3298_v41  ;;  %v1107_v38 = vmul.f32 %v4285_v0, %v1069_v51  ;;  %v1632_v28 = vsel %vm1626_vm4, %v1605_v14, %v3298_v41  ;;  %1481 = vrot.lane.b32.xlu1 %v4286_v55, %s2100_s5  ;;  %v834_v14 = vmul.f32 %v4280_v11, %v4290_v1 }
 0x22e   :  { %4283 = vst [vmem:[#allocation15_spill] sm:$0xff] %v3293_v62  ;;  %v1669_v43 = vmul.f32 %v4278_v53, %v1632_v28  ;;  %1594 = vrot.lane.b32.xlu0 %v4287_v58, %s2105_s18  ;;  %v869_v62 = vadd.f32 %v4288_v4, %v833_v21  ;;  %v1015_v28 = vadd.f32 %v999_v13, %v963_v17 }
 0x22f   :  { %v1123_v34 = vadd.f32 %v1107_v38, %v1014_v45  ;;  %v3313_v51 = vpop.permute.xlu1 %1047  ;;  %v1533_v1 = vsel %vm1517_vm2, %v3135_v36, %v3177_v18  ;;  %v4292_v38 = vld [vmem:[#allocation52_spill] sm:$0xff]  ;;  %v4295_v18 = vld [vmem:[#allocation53_spill] sm:$0xff] }
 0x230   :  { %v3317_v41 = vadd.f32 %v1669_v43, %v1576_v10  ;;  %v1065_v59 = vsel %vm1057_vm11, %v1040_v12, %v3313_v51  ;;  %v3322_v22 = vpop.permute.xlu0 %1285  ;;  %v870_v12 = vadd.f32 %v4288_v4, %v834_v14 }
 0x231   :  { %v1108_v21 = vmul.f32 %v4285_v0, %v1065_v59  ;;  %1592 = vrot.lane.b32.xlu1 %v2818_v60, %s2105_s18  ;;  %v1163_v45 = vadd.f32 %v1123_v34, %v869_v62  ;;  %v4293_v60 = vld [vmem:[#allocation25_spill] sm:$0xff]  ;;  %v4294_v34 = vld [vmem:[#allocation23_spill] sm:$0xff] }
 0x232   :  { %4291 = vst [vmem:[#allocation55_spill] sm:$0xff] %v3317_v41  ;;  %1602 = vrot.lane.b32.xlu0 %v4292_v38, %s2105_s18  ;;  %v1566_v62 = vmul.f32 %v4293_v60, %v1533_v1  ;;  %v1567_v1 = vmul.f32 %v4293_v60, %v3202_v23 }
 0x233   :  { %v1124_v10 = vadd.f32 %v1108_v21, %v1015_v28  ;;  %v1399_v43 = vpop.permute.xlu1 %1398 }
 0x234   :  { %v1440_v17 = vsel %vm1424_vm0, %v3170_v30, %v1399_v43  ;;  %v3337_v40 = vpop.permute.xlu0 %876 }
 0x235   :  { %v1148_v13 = vsel %vm3006_vm12, %v1124_v10, 0.0  ;;  %v1473_v36 = vmul.f32 %v4294_v34, %v1440_v17  ;;  %1598 = vrot.lane.b32.xlu1 %v2650_v57, %s2105_s18 }
 0x236   :  { %1610 = vrot.lane.b32.xlu0 %v4295_v18, %s2105_s18  ;;  %v1164_v14 = vadd.f32 %v1148_v13, %v870_v12  ;;  %v1525_v12 = vsel %vm1517_vm2, %v3195_v33, %v3213_v24 }
 0x237   :  { %v3347_v59 = vadd.f32 %v1566_v62, %v1473_v36  ;;  %v1407_v28 = vpop.permute.xlu1 %1406  ;;  %v1568_v13 = vmul.f32 %v4293_v60, %v1525_v12 }
 0x238   :  { %v1436_v30 = vsel %vm1424_vm0, %v1399_v43, %v1407_v28  ;;  %v1022_v21 = vpop.permute.xlu0 %1021 }
 0x239   :  { %4296 = vst [vmem:[#allocation20_spill] sm:$0xff] %v3347_v59  ;;  %v1474_v10 = vmul.f32 %v4294_v34, %v1436_v30  ;;  %1606 = vrot.lane.b32.xlu1 %v2669_v39, %s2105_s18  ;;  %v4299_v30 = vld [vmem:[#allocation46_spill] sm:$0xff]  ;;  %v4301_v59 = vld [vmem:[#allocation16_spill] sm:$0xff] }
 0x23a   :  { %1618 = vrot.lane.b32.xlu0 %v3131_v50, %s2105_s18 }
 0x23b   :  { %v3362_v17 = vadd.f32 %v1567_v1, %v1474_v10  ;;  %v3364_v43 = vpop.permute.xlu1 %1414  ;;  %v4300_v1 = vld [vmem:[#allocation19_spill] sm:$0xff] }
 0x23c   :  { %4298 = vst [vmem:[#allocation63_spill] sm:$0xff] %v3364_v43  ;;  %v1432_v23 = vsel %vm1424_vm0, %v1407_v28, %v3364_v43  ;;  %v885_v62 = vpop.permute.xlu0 %884  ;;  %v994_v10 = vmul.f32 %v4300_v1, %v4299_v30 }
 0x23d   :  { %4297 = vst [vmem:[#allocation21_spill] sm:$0xff] %v3362_v17  ;;  %v1475_v36 = vmul.f32 %v4294_v34, %v1432_v23  ;;  %v923_v33 = vsel %vm912_vm10, %v3337_v40, %v885_v62  ;;  %1614 = vrot.lane.b32.xlu1 %v2696_v2, %s2105_s18  ;;  %v4302_v34 = vld [vmem:[#allocation47_spill] sm:$0xff] }
 0x23e   :  { %v958_v41 = vmul.f32 %v4301_v59, %v923_v33  ;;  %1283 = vrot.lane.b32.xlu0 %v4287_v58, %s2106_s19  ;;  %v995_v43 = vmul.f32 %v4300_v1, %v4302_v34  ;;  %v4303_v33 = vld [vmem:[#allocation27_spill] sm:$0xff]  ;;  %v4304_v34 = vld [vmem:[#allocation49_spill] sm:$0xff] }
 0x23f   :  { %v1584_v28 = vadd.f32 %v1568_v13, %v1475_v36  ;;  %v3381_v24 = vpop.permute.xlu1 %1180 }
 0x240   :  { %v1010_v12 = vadd.f32 %v994_v10, %v958_v41  ;;  %v893_v23 = vpop.permute.xlu0 %892 }
 0x241   :  { %v919_v60 = vsel %vm912_vm10, %v885_v62, %v893_v23  ;;  %1622 = vrot.lane.b32.xlu1 %v3166_v31, %s2105_s18 }
 0x242   :  { %v959_v30 = vmul.f32 %v4301_v59, %v919_v60  ;;  %1291 = vrot.lane.b32.xlu0 %v4292_v38, %s2106_s19  ;;  %v996_v60 = vmul.f32 %v4300_v1, %v4304_v34 }
 0x243   :  { %v1189_v58 = vpop.permute.xlu1 %1188 }
 0x244   :  { %v1011_v13 = vadd.f32 %v995_v43, %v959_v30  ;;  %v1218_v41 = vsel %vm1206_vm3, %v3381_v24, %v1189_v58  ;;  %v901_v36 = vpop.permute.xlu0 %900 }
 0x245   :  { %v1256_v62 = vmul.f32 %v4303_v33, %v1218_v41  ;;  %v915_v10 = vsel %vm912_vm10, %v893_v23, %v901_v36  ;;  %1287 = vrot.lane.b32.xlu1 %v2650_v57, %s2106_s19 }
 0x246   :  { %v960_v38 = vmul.f32 %v4301_v59, %v915_v10  ;;  %1299 = vrot.lane.b32.xlu0 %v4295_v18, %s2106_s19  ;;  %v4308_v10 = vld [vmem:[#allocation3_spill] sm:$0xff] }
 0x247   :  { %v3405_v43 = vadd.f32 %v1256_v62, %v1163_v45  ;;  %v3407_v30 = vpop.permute.xlu1 %1196  ;;  %v4307_v62 = vld [vmem:[#allocation11_spill] sm:$0xff] }
 0x248   :  { %v3409_v17 = vadd.f32 %v996_v60, %v960_v38  ;;  %v1214_v23 = vsel %vm1206_vm3, %v1189_v58, %v3407_v30  ;;  %v1030_v41 = vpop.permute.xlu0 %1029  ;;  %v829_v58 = vmul.f32 %v4308_v10, %v4307_v62  ;;  %v4312_v62 = vld [vmem:[#allocation12_spill] sm:$0xff] }
 0x249   :  { %4305 = vst [vmem:[#allocation51_spill] sm:$0xff] %v3405_v43  ;;  %v1257_v57 = vmul.f32 %v4303_v33, %v1214_v23  ;;  %v3417_v36 = vsel %vm1057_vm11, %v1022_v21, %v1030_v41  ;;  %1295 = vrot.lane.b32.xlu1 %v2669_v39, %s2106_s19  ;;  %v4309_v21 = vld [vmem:[#allocation22_spill] sm:$0xff]  ;;  %v830_v43 = vmul.f32 %v4308_v10, %v4312_v62 }
 0x24a   :  { %1307 = vrot.lane.b32.xlu0 %v3131_v50, %s2106_s19  ;;  %v4310_v39 = vld [vmem:[#allocation50_spill] sm:$0xff] }
 0x24b   :  { %v3423_v45 = vadd.f32 %v1257_v57, %v1164_v14  ;;  %v3425_v18 = vpop.permute.xlu1 %1600  ;;  %v4311_v14 = vld [vmem:[#allocation8_spill] sm:$0xff] }
 0x24c   :  { %v1038_v34 = vpop.permute.xlu0 %1037  ;;  %v865_v23 = vadd.f32 %v4311_v14, %v829_v58  ;;  %v145_v58 = vld [vmem:[%s4055_s8] sm:$0xff] }
 0x24d   :  { %4306 = vst [vmem:[#allocation10_spill] sm:$0xff] %v3423_v45  ;;  %v1068_v60 = vsel %vm1057_vm11, %v1030_v41, %v1038_v34  ;;  %1303 = vrot.lane.b32.xlu1 %v2696_v2, %s2106_s19 }
 0x24e   :  { %v1103_v38 = vmul.f32 %v4309_v21, %v1068_v60  ;;  %1275 = vrot.lane.b32.xlu0 %v4310_v39, %s2106_s19 }
 0x24f   :  { %v3436_v50 = vpop.permute.xlu1 %1608 }
 0x250   :  { %v1119_v57 = vadd.f32 %v1103_v38, %v1010_v12  ;;  %v3439_v45 = vpop.permute.xlu0 %1045 }
 0x251   :  { %v1064_v41 = vsel %vm1057_vm11, %v1038_v34, %v3439_v45  ;;  %1311 = vrot.lane.b32.xlu1 %v3166_v31, %s2106_s19 }
 0x252   :  { %v3448_v2 = vadd.f32 %v1119_v57, %v865_v23  ;;  %v1104_v60 = vmul.f32 %v4309_v21, %v1064_v41  ;;  %1586 = vrot.lane.b32.xlu0 %v4310_v39, %s2105_s18  ;;  %v866_v23 = vadd.f32 %v4311_v14, %v830_v43  ;;  %v4316_v57 = vld [vmem:[#allocation33_spill] sm:$0xff]  ;;  %v4317_v39 = vld [vmem:[#allocation66_spill] sm:$0xff]  ;;  %v4321_v43 = vld [vmem:[#allocation67_spill] sm:$0xff] }
 0x253   :  { %v3453_v12 = vpop.permute.xlu1 %1616 }
 0x254   :  { %4313 = vst [vmem:[#allocation56_spill] sm:$0xff] %v3448_v2  ;;  %4314 = vst [vmem:[#allocation17_spill] sm:$0xff] %v3453_v12  ;;  %v1120_v38 = vadd.f32 %v1104_v60, %v1011_v13  ;;  %v1634_v34 = vsel %vm1626_vm4, %v3436_v50, %v3453_v12  ;;  %v3462_v31 = vpop.permute.xlu0 %1511 }
 0x255   :  { %4315 = vst [vmem:[#allocation52_spill] sm:$0xff] %v3462_v31  ;;  %v1677_v62 = vmul.f32 %v4316_v57, %v1634_v34  ;;  %1279 = vrot.lane.b32.xlu1 %v4317_v39, %s2106_s19  ;;  %v4322_v34 = vld [vmem:[#allocation64_spill] sm:$0xff] }
 0x256   :  { %v1144_v41 = vsel %vm3006_vm12, %v1120_v38, 0.0  ;;  %1841 = vperm.xlu0 %2063, %v145_v58   ;;  %v914_v53 = vsel %vm912_vm10, %v4322_v34, %v4321_v43  ;;  %v1071_v58 = vsel %vm1057_vm11, %v4323_v3, %v2957_v47  ;;  %v4325_v34 = vld [vmem:[#allocation6_spill] sm:$0xff]  ;;  %v4327_v3 = vld [vmem:[#allocation48_spill] sm:$0xff] }
 0x257   :  { %v3470_v2 = vadd.f32 %v1144_v41, %v866_v23  ;;  %v3472_v13 = vadd.f32 %v1677_v62, %v1584_v28  ;;  %v3474_v60 = vpop.permute.xlu1 %1289  ;;  %v662_v28 = vand.u32 255, %v2543_v26  ;;  %v956_v62 = vmul.f32 %v2448_v35, %v914_v53 }
 0x258   :  { %4320 = vst [vmem:[#allocation19_spill] sm:$0xff] %v3474_v60  ;;  %v3476_v12 = vpop.permute.xlu0 %1418  ;;  %v992_v60 = vmul.f32 %v2481_v48, %v4327_v3  ;;  %v1098_v31 = vmul.f32 %v2494_v54, %v1071_v58  ;;  %v4331_v58 = vld [vmem:[#allocation2_spill] sm:$0xff]  ;;  %v4332_v3 = vld [vmem:[#allocation5_spill] sm:$0xff] }
 0x259   :  { %4318 = vst [vmem:[#allocation53_spill] sm:$0xff] %v3470_v2  ;;  %4319 = vst [vmem:[#allocation46_spill] sm:$0xff] %v3472_v13  ;;  %1590 = vrot.lane.b32.xlu1 %v4317_v39, %s2105_s18  ;;  %v4324_v39 = vld [vmem:[#allocation43_spill] sm:$0xff]  ;;  %v824_v2 = vmul.f32 %v2374_v63, %v4325_v34  ;;  %vm3503_vm5 = vcmp.ge.s32.totalorder %v662_v28, 16  ;;  %v820_v28 = vmul.f32 %v2372_v61, %v4331_v58 }
 0x25a   :  { %v989_v41 = vmul.f32 %v2481_v48, %v4324_v39  ;;  %v4326_v13 = vld [vmem:[#allocation7_spill] sm:$0xff]  ;;  %v1008_v34 = vadd.f32 %v992_v60, %v956_v62  ;;  %v823_v60 = vmul.f32 %v2372_v61, %v4332_v3  ;;  %v1073_v58 = vsel %vm1057_vm11, %v3151_v7, %v3271_v27  ;;  %v4340_v27 = vld [vmem:[#allocation57_spill] sm:$0xff] }
 0x25b   :  { %v907_v57 = vpop.permute.xlu1 %906  ;;  %v827_v47 = vmul.f32 %v2374_v63, %v4326_v13  ;;  %v4330_v39 = vld [vmem:[#allocation71_spill] sm:$0xff]  ;;  %v1220_v63 = vsel %vm1206_vm3, %v3124_v20, %v3217_v29 }
 0x25c   :  { %v926_v38 = vsel %vm912_vm10, %v907_v57, %v2896_v44  ;;  %v1201_v23 = vpop.permute.xlu0 %1200  ;;  %v859_v61 = vadd.f32 %v2403_v15, %v823_v60  ;;  %v4338_v60 = vld [vmem:[#allocation54_spill] sm:$0xff] }
 0x25d   :  { %v953_v43 = vmul.f32 %v2448_v35, %v926_v38  ;;  %v863_v62 = vadd.f32 %v2410_v19, %v827_v47 }
 0x25f   :  { %v1005_v44 = vadd.f32 %v989_v41, %v953_v43  ;;  %v1052_v57 = vpop.permute.xlu1 %1051  ;;  %v860_v41 = vadd.f32 %v2410_v19, %v824_v2  ;;  %v1208_v43 = vsel %vm1206_vm3, %v3236_v49, %v1201_v23  ;;  %v856_v49 = vadd.f32 %v2403_v15, %v820_v28  ;;  %v4333_v19 = vld [vmem:[#allocation68_spill] sm:$0xff]  ;;  %v4334_v23 = vld [vmem:[#allocation65_spill] sm:$0xff] }
 0x260   :  { %v1059_v35 = vsel %vm1057_vm11, %v4330_v39, %v1052_v57  ;;  %v3510_v38 = vpop.permute.xlu0 %1620  ;;  %v1250_v2 = vmul.f32 %v2508_v5, %v1208_v43  ;;  %v913_v47 = vsel %vm912_vm10, %v4334_v23, %v4333_v19  ;;  %v4337_v43 = vld [vmem:[#allocation69_spill] sm:$0xff]  ;;  %v4342_v19 = vld [vmem:[#allocation44_spill] sm:$0xff]  ;;  %v1106_v23 = vmul.f32 %v4285_v0, %v1073_v58 }
 0x261   :  { %v1114_v48 = vadd.f32 %v1098_v31, %v1005_v44  ;;  %v1101_v13 = vmul.f32 %v2494_v54, %v1059_v35  ;;  %v1247_v54 = vmul.f32 %v2508_v5, %v1220_v63  ;;  %v4335_v63 = vld [vmem:[#allocation14_spill] sm:$0xff]  ;;  %v964_v5 = vmul.f32 %v2467_v42, %v3251_v16 }
 0x262   :  { %v952_v7 = vmul.f32 %v2441_v32, %v913_v47 }
 0x263   :  { %v1138_v29 = vsel %vm3503_vm5, %v1114_v48, 0.0  ;;  %v1117_v20 = vadd.f32 %v1101_v13, %v1008_v34  ;;  %v3528_v31 = vpop.permute.xlu1 %1515  ;;  %v832_v13 = vmul.f32 %v4280_v11, %v4335_v63 }
 0x264   :  { %v1510_v44 = vpop.permute.xlu0 %1509  ;;  %v1154_v57 = vadd.f32 %v1138_v29, %v860_v41  ;;  %v4336_v41 = vld [vmem:[#allocation70_spill] sm:$0xff] }
 0x265   :  { %v1157_v39 = vadd.f32 %v1117_v20, %v863_v62  ;;  %v1070_v3 = vsel %vm1057_vm11, %v4337_v43, %v4336_v41  ;;  %v997_v62 = vmul.f32 %v4282_v8, %v4338_v60  ;;  %v4339_v29 = vld [vmem:[#allocation62_spill] sm:$0xff]  ;;  %v4343_v60 = vld [vmem:[#allocation60_spill] sm:$0xff] }
 0x266   :  { %v3532_v35 = vadd.f32 %v1247_v54, %v1154_v57  ;;  %v985_v54 = vmul.f32 %v2477_v46, %v2579_v37  ;;  %v1094_v47 = vmul.f32 %v2498_v56, %v1070_v3 }
 0x267   :  { %v911_v34 = vpop.permute.xlu1 %910  ;;  %v3540_v48 = vadd.f32 %v1250_v2, %v1157_v39  ;;  %v4341_v2 = vld [vmem:[#allocation18_spill] sm:$0xff] }
 0x268   :  { %v928_v15 = vsel %vm912_vm10, %v911_v34, %v3144_v9  ;;  %v905_v28 = vpop.permute.xlu0 %904  ;;  %v1000_v9 = vmul.f32 %v4282_v8, %v4340_v27  ;;  %v835_v39 = vmul.f32 %v4280_v11, %v4341_v2 }
 0x269   :  { %v961_v16 = vmul.f32 %v2467_v42, %v928_v15  ;;  %v925_v20 = vsel %vm912_vm10, %v905_v28, %v4339_v29  ;;  %v988_v42 = vmul.f32 %v2477_v46, %v4342_v19 }
 0x26a   :  { %v949_v57 = vmul.f32 %v2441_v32, %v925_v20  ;;  %v1016_v15 = vadd.f32 %v1000_v9, %v964_v5  ;;  %v1222_v32 = vsel %vm1206_vm3, %v3159_v25, %v3381_v24  ;;  %v868_v5 = vadd.f32 %v4288_v4, %v832_v13  ;;  %v4345_v9 = vld [vmem:[#allocation28_spill] sm:$0xff] }
 0x26b   :  { %v1013_v34 = vadd.f32 %v997_v62, %v961_v16  ;;  %v1056_v63 = vpop.permute.xlu1 %1055  ;;  %v1004_v41 = vadd.f32 %v988_v42, %v952_v7  ;;  %v1518_v62 = vsel %vm1517_vm2, %v4343_v60, %v1510_v44  ;;  %v4344_v7 = vld [vmem:[#allocation30_spill] sm:$0xff] }
 0x26c   :  { %v1001_v28 = vadd.f32 %v985_v54, %v949_v57  ;;  %v1061_v37 = vsel %vm1057_vm11, %v3313_v51, %v1056_v63  ;;  %v1050_v8 = vpop.permute.xlu0 %1049  ;;  %v871_v51 = vadd.f32 %v4288_v4, %v835_v39  ;;  %v1557_v27 = vmul.f32 %v4344_v7, %v1518_v62  ;;  %v4346_v63 = vld [vmem:[#allocation85_spill] sm:$0xff] }
 0x26d   :  { %v1122_v11 = vadd.f32 %v1106_v23, %v1013_v34  ;;  %v1109_v46 = vmul.f32 %v4285_v0, %v1061_v37  ;;  %v1058_v58 = vsel %vm1057_vm11, %v3020_v6, %v1050_v8  ;;  %v1255_v6 = vmul.f32 %v4303_v33, %v1222_v32 }
 0x26e   :  { %v1110_v43 = vadd.f32 %v1094_v47, %v1001_v28  ;;  %v1097_v3 = vmul.f32 %v2498_v56, %v1058_v58  ;;  %v4347_v47 = vld [vmem:[#allocation34_spill] sm:$0xff]  ;;  %v4349_v58 = vld [vmem:[#allocation13_spill] sm:$0xff] }
 0x26f   :  { %v1146_v25 = vsel %vm3503_vm5, %v1122_v11, 0.0  ;;  %v1125_v24 = vadd.f32 %v1109_v46, %v1016_v15  ;;  %v3594_v0 = vpop.permute.xlu1 %1422  ;;  %v4348_v11 = vld [vmem:[#allocation9_spill] sm:$0xff] }
 0x270   :  { %v1113_v16 = vadd.f32 %v1097_v3, %v1004_v41  ;;  %v1417_v13 = vpop.permute.xlu0 %1416  ;;  %v1134_v29 = vsel %vm3503_vm5, %v1110_v43, 0.0  ;;  %v1162_v56 = vadd.f32 %v1146_v25, %v868_v5  ;;  %v828_v46 = vmul.f32 %v4308_v10, %v4348_v11  ;;  %v4350_v41 = vld [vmem:[#allocation42_spill] sm:$0xff] }
 0x271   :  { %v1425_v4 = vsel %vm1424_vm0, %v3065_v52, %v1417_v13  ;;  %v1165_v20 = vadd.f32 %v1125_v24, %v871_v51  ;;  %v3602_v44 = vadd.f32 %v1134_v29, %v856_v49  ;;  %v831_v5 = vmul.f32 %v4308_v10, %v4349_v58  ;;  %v4354_v13 = vld [vmem:[#allocation93_spill] sm:$0xff] }
 0x272   :  { %v1464_v54 = vmul.f32 %v4345_v9, %v1425_v4  ;;  %v1153_v57 = vadd.f32 %v1113_v16, %v859_v61  ;;  %v3606_v2 = vadd.f32 %v1255_v6, %v1162_v56  ;;  %v669_v43 = vand.u32 255, %v4350_v41  ;;  %v4355_v56 = vld [vmem:[#allocation82_spill] sm:$0xff] }
 0x273   :  { %v1205_v39 = vpop.permute.xlu1 %1204  ;;  %v1102_v51 = vmul.f32 %v4309_v21, %v3417_v36  ;;  %v864_v10 = vadd.f32 %v4311_v14, %v828_v46  ;;  %v867_v6 = vadd.f32 %v4311_v14, %v831_v5  ;;  %v4365_v46 = vld [vmem:[#allocation45_spill] sm:$0xff] }
 0x274   :  { %v3608_v19 = vadd.f32 %v1557_v27, %v1464_v54  ;;  %v1210_v42 = vsel %vm1206_vm3, %v3407_v30, %v1205_v39  ;;  %v1199_v23 = vpop.permute.xlu0 %1198  ;;  %v993_v30 = vmul.f32 %v4300_v1, %v4286_v55  ;;  %vm3645_vm7 = vcmp.lt.s32.totalorder %v669_v43, 240  ;;  %v4356_v27 = vld [vmem:[#allocation31_spill] sm:$0xff] }
 0x275   :  { %v1258_v34 = vmul.f32 %v4303_v33, %v1210_v42  ;;  %v1207_v49 = vsel %vm1206_vm3, %v4346_v63, %v1199_v23  ;;  %v683_v58 = vand.u32 255, %v4365_v46  ;;  %v4366_v43 = vld [vmem:[#allocation95_spill] sm:$0xff] }
 0x276   :  { %v1246_v15 = vmul.f32 %v4347_v47, %v1207_v49  ;;  %v4362_v49 = vld [vmem:[#allocation36_spill] sm:$0xff] }
 0x277   :  { %v3618_v28 = vadd.f32 %v1258_v34, %v1165_v20  ;;  %v1625_v61 = vpop.permute.xlu1 %1624  ;;  %v4361_v34 = vld [vmem:[#allocation4_spill] sm:$0xff]  ;;  %vm3700_vm8 = vcmp.lt.s32.totalorder %v683_v58, 240 }
 0x278   :  { %v3620_v37 = vadd.f32 %v1246_v15, %v1153_v57  ;;  %v909_v8 = vpop.permute.xlu0 %908  ;;  %v4357_v57 = vld [vmem:[#allocation29_spill] sm:$0xff]  ;;  %v1628_v53 = vsel %vm1626_vm4, %v4361_v34, %v3510_v38 }
 0x279   :  { %v927_v32 = vsel %vm912_vm10, %v909_v8, %v3337_v40 }
 0x27a   :  { %v957_v33 = vmul.f32 %v4301_v59, %v927_v32  ;;  %v4351_v59 = vld [vmem:[#allocation76_spill] sm:$0xff]  ;;  %v4363_v32 = vld [vmem:[#allocation33_spill] sm:$0xff] }
 0x27b   :  { %v1514_v3 = vpop.permute.xlu1 %1513 }
 0x27c   :  { %v1009_v62 = vadd.f32 %v993_v30, %v957_v33  ;;  %v1054_v25 = vpop.permute.xlu0 %1053  ;;  %v1520_v1 = vsel %vm1517_vm2, %v4351_v59, %v1514_v3  ;;  %v4364_v33 = vld [vmem:[#allocation24_spill] sm:$0xff] }
 0x27d   :  { %v1060_v55 = vsel %vm1057_vm11, %v3439_v45, %v1054_v25  ;;  %v1638_v45 = vsel %vm1626_vm4, %v3425_v18, %v3436_v50  ;;  %v1565_v54 = vmul.f32 %v4356_v27, %v1520_v1  ;;  %v4368_v25 = vld [vmem:[#allocation26_spill] sm:$0xff] }
 0x27e   :  { %v1118_v40 = vadd.f32 %v1102_v51, %v1009_v62  ;;  %v1105_v24 = vmul.f32 %v4309_v21, %v1060_v55  ;;  %v1426_v21 = vsel %vm1424_vm0, %v4354_v13, %v3476_v12  ;;  %v4359_v12 = vld [vmem:[#allocation52_spill] sm:$0xff]  ;;  %v1676_v30 = vmul.f32 %v4363_v32, %v1638_v45  ;;  %v4367_v62 = vld [vmem:[#allocation15_spill] sm:$0xff]  ;;  %v4370_v45 = vld [vmem:[#allocation21_spill] sm:$0xff] }
 0x27f   :  { %v1421_v16 = vpop.permute.xlu1 %1420  ;;  %v1468_v11 = vmul.f32 %v4364_v33, %v1426_v21  ;;  %v1708_v38 = vsel %vm3645_vm7, %v4367_v62, 0.0 }
 0x280   :  { %v1121_v29 = vadd.f32 %v1105_v24, %v3409_v17  ;;  %v1427_v14 = vsel %vm1424_vm0, %v4355_v56, %v1421_v16  ;;  %v1294_v4 = vpop.permute.xlu0 %1293  ;;  %v1142_v20 = vsel %vm3503_vm5, %v1118_v40, 0.0  ;;  %v4360_v17 = vld [vmem:[#allocation91_spill] sm:$0xff]  ;;  %v4369_v40 = vld [vmem:[#allocation32_spill] sm:$0xff]  ;;  %v1692_v16 = vadd.f32 %v1676_v30, %v4370_v45  ;;  %v4378_v30 = vld [vmem:[#allocation37_spill] sm:$0xff] }
 0x281   :  { %v1472_v50 = vmul.f32 %v4357_v57, %v1427_v14  ;;  %v1325_v39 = vsel %vm1315_vm6, %v3322_v22, %v1294_v4  ;;  %v3668_v42 = vadd.f32 %v1142_v20, %v864_v10  ;;  %v1519_v23 = vsel %vm1517_vm2, %v4360_v17, %v4359_v12  ;;  %v4376_v17 = vld [vmem:[#allocation19_spill] sm:$0xff] }
 0x282   :  { %v1357_v15 = vmul.f32 %v4362_v49, %v1325_v39  ;;  %v3679_v8 = vadd.f32 %v1121_v29, %v867_v6  ;;  %v1561_v55 = vmul.f32 %v4368_v25, %v1519_v23  ;;  %v1670_v1 = vmul.f32 %v4369_v40, %v1628_v53  ;;  %v4373_v29 = vld [vmem:[#allocation63_spill] sm:$0xff]  ;;  %v4375_v39 = vld [vmem:[#allocation96_spill] sm:$0xff] }
 0x283   :  { %4358 = vst [vmem:[#allocation16_spill] sm:$0xff] %v3668_v42  ;;  %v3684_v5 = vadd.f32 %v1565_v54, %v1472_v50  ;;  %v3686_v41 = vpop.permute.xlu1 %1202  ;;  %v1428_v14 = vsel %vm1424_vm0, %v4373_v29, %v3594_v0  ;;  %v4374_v54 = vld [vmem:[#allocation94_spill] sm:$0xff]  ;;  %v4410_v42 = vld [vmem:[#allocation77_spill] sm:$0xff] }
 0x284   :  { %v1373_v3 = vadd.f32 %v1357_v15, %v4366_v43  ;;  %v1302_v51 = vpop.permute.xlu0 %1301  ;;  %v1577_v13 = vadd.f32 %v1561_v55, %v1468_v11  ;;  %v4377_v15 = vld [vmem:[#allocation17_spill] sm:$0xff]  ;;  %v4380_v43 = vld [vmem:[#allocation55_spill] sm:$0xff] }
 0x285   :  { %v1321_v24 = vsel %vm1315_vm6, %v1294_v4, %v1302_v51  ;;  %v1521_v4 = vsel %vm1517_vm2, %v4374_v54, %v3528_v31  ;;  %v1630_v0 = vsel %vm1626_vm4, %v4377_v15, %v1625_v61  ;;  %v4379_v31 = vld [vmem:[#allocation23_spill] sm:$0xff]  ;;  %v4381_v55 = vld [vmem:[#allocation25_spill] sm:$0xff] }
 0x286   :  { %v3696_v10 = vadd.f32 %v1708_v38, %v1373_v3  ;;  %v1358_v6 = vmul.f32 %v4362_v49, %v1321_v24  ;;  %v1686_v53 = vadd.f32 %v1670_v1, %v1577_v13  ;;  %v1476_v58 = vmul.f32 %v4379_v31, %v1428_v14  ;;  %v4382_v24 = vld [vmem:[#allocation51_spill] sm:$0xff] }
 0x287   :  { %v1298_v20 = vpop.permute.xlu1 %1297  ;;  %v1716_v38 = vsel %vm3645_vm7, %v1692_v16, 0.0  ;;  %v1569_v1 = vmul.f32 %v4381_v55, %v1521_v4  ;;  %v1678_v45 = vmul.f32 %v4363_v32, %v1630_v0 }
 0x288   :  { %v1796_v50 = vmul.f32 0.70710677, %v3696_v10  ;;  %v1374_v12 = vadd.f32 %v1358_v6, %v4375_v39  ;;  %v1327_v23 = vsel %vm1315_vm6, %v4376_v17, %v1298_v20  ;;  %v1310_v34 = vpop.permute.xlu0 %1309  ;;  %v1710_v54 = vsel %vm3700_vm8, %v1686_v53, 0.0  ;;  %v4384_v53 = vld [vmem:[#allocation46_spill] sm:$0xff] }
 0x289   :  { %v1365_v11 = vmul.f32 %v4378_v30, %v1327_v23  ;;  %v1317_v46 = vsel %vm1315_vm6, %v1302_v51, %v1310_v34  ;;  %v4383_v23 = vld [vmem:[#allocation10_spill] sm:$0xff] }
 0x28a   :  { %2065 = verf.f32 %v1796_v50  ;;  %v3725_v3 = vadd.f32 %v4380_v43, %v1374_v12  ;;  %v1359_v62 = vmul.f32 %v4362_v49, %v1317_v46  ;;  %v1585_v50 = vadd.f32 %v1569_v1, %v1476_v58 }
 0x28b   :  { %v1381_v61 = vadd.f32 %v1365_v11, %v4382_v24  ;;  %v1306_v6 = vpop.permute.xlu1 %1305 }
 0x28c   :  { %v1797_v51 = vmul.f32 0.70710677, %v3725_v3  ;;  %v1375_v13 = vadd.f32 %v1359_v62, %v3540_v48  ;;  %v1323_v29 = vsel %vm1315_vm6, %v1298_v20, %v1306_v6  ;;  %v3737_v14 = vpop.permute.xlu0 %1166  ;;  %v1694_v48 = vadd.f32 %v1678_v45, %v1585_v50 }
 0x28d   :  { %v1732_v16 = vadd.f32 %v1716_v38, %v1381_v61  ;;  %v1366_v4 = vmul.f32 %v4378_v30, %v1323_v29  ;;  %v4385_v61 = vld [vmem:[#allocation92_spill] sm:$0xff]  ;;  %v4387_v29 = vld [vmem:[#allocation90_spill] sm:$0xff] }
 0x28e   :  { %2067 = verf.f32 %v1797_v51  ;;  %v3742_v39 = vadd.f32 %v1710_v54, %v1375_v13  ;;  %v1718_v38 = vsel %vm3700_vm8, %v1694_v48, 0.0  ;;  %v4388_v54 = vld [vmem:[#allocation87_spill] sm:$0xff] }
 0x28f   :  { %v1748_v12 = vmul.f32 0.70710677, %v1732_v16  ;;  %v1382_v34 = vadd.f32 %v1366_v4, %v4383_v23  ;;  %v1314_v15 = vpop.permute.xlu1 %1313 }
 0x290   :  { %v1798_v0 = vmul.f32 0.70710677, %v3742_v39  ;;  %v1319_v20 = vsel %vm1315_vm6, %v1306_v6, %v1314_v15  ;;  %v1278_v11 = vpop.permute.xlu0 %1277  ;;  %v4386_v6 = vld [vmem:[#allocation89_spill] sm:$0xff] }
 0x291   :  { %2069 = verf.f32 %v1748_v12  ;;  %v1733_v46 = vadd.f32 %v4384_v53, %v1382_v34  ;;  %v1367_v31 = vmul.f32 %v4378_v30, %v1319_v20  ;;  %v1438_v45 = vsel %vm1424_vm0, %v4386_v6, %v4385_v61 }
 0x292   :  { %2071 = verf.f32 %v1798_v0  ;;  %v1788_v12 = vmul.f32 0.5, %v3696_v10  ;;  %v1329_v34 = vsel %vm1315_vm6, %v1278_v11, %v3322_v22  ;;  %v1465_v48 = vmul.f32 %v4364_v33, %v1438_v45  ;;  %v4389_v22 = vld [vmem:[#allocation97_spill] sm:$0xff] }
 0x293   :  { %v1749_v58 = vmul.f32 0.70710677, %v1733_v46  ;;  %v1383_v43 = vadd.f32 %v1367_v31, %v3618_v28  ;;  %v3751_v62 = vpop.permute.xlu1 %1170  ;;  %v1531_v28 = vsel %vm1517_vm2, %v4388_v54, %v4387_v29  ;;  %v1790_v29 = vmul.f32 0.5, %v3742_v39 }
 0x294   :  { %v3755_v55 = vpop.permute.xlu0 %1384  ;;  %v1558_v53 = vmul.f32 %v4368_v25, %v1531_v28 }
 0x295   :  { %2073 = verf.f32 %v1749_v58  ;;  %v1734_v1 = vadd.f32 %v1718_v38, %v1383_v43  ;;  %v1789_v58 = vmul.f32 0.5, %v3725_v3  ;;  %v1356_v43 = vmul.f32 %v4362_v49, %v1329_v34 }
 0x296   :  { %v1574_v11 = vadd.f32 %v1558_v53, %v1465_v48  ;;  %v1741_v48 = vmul.f32 0.5, %v1733_v46 }
 0x297   :  { %v2066_v24 = vpop.eup %2065  ;;  %v1750_v51 = vmul.f32 0.70710677, %v1734_v1  ;;  %v1282_v13 = vpop.permute.xlu1 %1281  ;;  %v1372_v49 = vadd.f32 %v1356_v43, %v3532_v35 }
 0x298   :  { %v1331_v4 = vsel %vm1315_vm6, %v1282_v13, %v4376_v17  ;;  %v3768_v50 = vpop.permute.xlu0 %1477  ;;  %v1812_v23 = vadd.f32 1.0, %v2066_v24 }
 0x299   :  { %2075 = verf.f32 %v1750_v51  ;;  %v1364_v15 = vmul.f32 %v4378_v30, %v1331_v4  ;;  %v1740_v51 = vmul.f32 0.5, %v1732_v16 }
 0x29a   :  { %v1820_v0 = vmul.f32 %v1812_v23, %v1788_v12 }
 0x29b   :  { %v2068_v20 = vpop.eup %2067  ;;  %v1380_v17 = vadd.f32 %v1364_v15, %v3606_v2  ;;  %v3778_v31 = vpop.permute.xlu1 %1388 }
 0x29c   :  { %v1589_v38 = vpop.permute.xlu0 %1588  ;;  %v1828_v24 = vmul.f32 %v1820_v0, %v1732_v16  ;;  %v1813_v61 = vadd.f32 1.0, %v2068_v20 }
 0x29d   :  { %v1640_v30 = vsel %vm1626_vm4, %v1589_v38, %v4389_v22 }
 0x29e   :  { %v2070_v33 = vpop.eup %2069  ;;  %v1667_v6 = vmul.f32 %v4369_v40, %v1640_v30  ;;  %v1821_v25 = vmul.f32 %v1813_v61, %v1789_v58 }
 0x29f   :  { %v2072_v45 = vpop.eup %2071  ;;  %v3786_v2 = vpop.permute.xlu1 %1481  ;;  %v1764_v13 = vadd.f32 1.0, %v2070_v33 }
 0x2a0   :  { %v1683_v54 = vadd.f32 %v1667_v6, %v1574_v11  ;;  %v3790_v28 = vpop.permute.xlu0 %1594  ;;  %v1814_v4 = vadd.f32 1.0, %v2072_v45  ;;  %v1829_v12 = vmul.f32 %v1821_v25, %v1733_v46  ;;  %v4390_v46 = vld [vmem:[#allocation20_spill] sm:$0xff] }
 0x2a1   :  { %v1772_v23 = vmul.f32 %v1764_v13, %v1740_v51  ;;  %v4393_v51 = vld [vmem:[#allocation75_spill] sm:$0xff] }
 0x2a2   :  { %v2074_v34 = vpop.eup %2073  ;;  %v3792_v15 = vadd.f32 %v1683_v54, %v1372_v49  ;;  %v1822_v40 = vmul.f32 %v1814_v4, %v1790_v29  ;;  %v4394_v49 = vld [vmem:[#allocation59_spill] sm:$0xff]  ;;  %v4395_v54 = vld [vmem:[#allocation58_spill] sm:$0xff] }
 0x2a3   :  { %v1593_v0 = vpop.permute.xlu1 %1592  ;;  %v1780_v20 = vmul.f32 %v1772_v23, %v3696_v10  ;;  %v1765_v16 = vadd.f32 1.0, %v2074_v34  ;;  %v1742_v10 = vmul.f32 0.5, %v1734_v1  ;;  %v1526_v4 = vsel %vm1517_vm2, %v4395_v54, %v4394_v49  ;;  %v4397_v23 = vld [vmem:[#allocation79_spill] sm:$0xff] }
 0x2a4   :  { %v1795_v53 = vmul.f32 0.70710677, %v3792_v15  ;;  %v1642_v35 = vsel %vm1626_vm4, %v1593_v0, %v3425_v18  ;;  %v3799_v58 = vpop.permute.xlu0 %1602  ;;  %v1830_v43 = vmul.f32 %v1822_v40, %v1734_v1  ;;  %v4392_v18 = vld [vmem:[#allocation78_spill] sm:$0xff]  ;;  %v4396_v1 = vld [vmem:[#allocation80_spill] sm:$0xff]  ;;  %v4399_v40 = vld [vmem:[#allocation81_spill] sm:$0xff] }
 0x2a5   :  { %v1675_v38 = vmul.f32 %v4363_v32, %v1642_v35  ;;  %v1836_v61 = vadd.f32 %v1828_v24, %v1780_v20  ;;  %v1773_v22 = vmul.f32 %v1765_v16, %v1741_v48  ;;  %v1433_v13 = vsel %vm1424_vm0, %v4393_v51, %v4392_v18  ;;  %v4401_v35 = vld [vmem:[#allocation72_spill] sm:$0xff] }
 0x2a6   :  { %v2076_v30 = vpop.eup %2075  ;;  %2077 = verf.f32 %v1795_v53  ;;  %v1435_v34 = vsel %vm1424_vm0, %v4397_v23, %v4396_v1  ;;  %v1522_v16 = vsel %vm1517_vm2, %v4394_v49, %v4343_v60  ;;  %v4400_v53 = vld [vmem:[#allocation74_spill] sm:$0xff] }
 0x2a7   :  { %v1691_v33 = vadd.f32 %v1675_v38, %v4390_v46  ;;  %v3803_v11 = vpop.permute.xlu1 %1598  ;;  %1875 = vmatprep.subr.mxu0 %v1836_v61  ;;  %v1766_v6 = vadd.f32 1.0, %v2076_v30  ;;  %v1781_v25 = vmul.f32 %v1773_v22, %v3725_v3  ;;  %v1429_v3 = vsel %vm1424_vm0, %v4392_v18, %v3065_v52 }
 0x2a8   :  { %4391 = vst [vmem:[#allocation47_spill] sm:$0xff] %v3803_v11  ;;  %v1611_v45 = vpop.permute.xlu0 %1610  ;;  %v1524_v38 = vsel %vm1517_vm2, %v4400_v53, %v4351_v59  ;;  %v1462_v61 = vmul.f32 %v4345_v9, %v1433_v13  ;;  %v1470_v30 = vmul.f32 %v4357_v57, %v1435_v34  ;;  %v1555_v59 = vmul.f32 %v4344_v7, %v1526_v4 }
 0x2a9   :  { %v3810_v32 = vadd.f32 %v1691_v33, %v1380_v17  ;;  %v1774_v24 = vmul.f32 %v1766_v6, %v1742_v10  ;;  %v1837_v29 = vadd.f32 %v1829_v12, %v1781_v25  ;;  %v1431_v17 = vsel %vm1424_vm0, %v4396_v1, %v4355_v56  ;;  %v4398_v12 = vld [vmem:[#allocation83_spill] sm:$0xff] }
 0x2aa   :  { %v1215_v48 = vsel %vm1206_vm3, %v4399_v40, %v4398_v12  ;;  %v1528_v56 = vsel %vm1517_vm2, %v4401_v35, %v4400_v53  ;;  %v1471_v60 = vmul.f32 %v4357_v57, %v1431_v17  ;;  %v1635_v10 = vsel %vm1626_vm4, %v3790_v28, %v3799_v58  ;;  %v4403_v17 = vld [vmem:[#allocation38_spill] sm:$0xff] }
 0x2ab   :  { %v1747_v0 = vmul.f32 0.70710677, %v3810_v32  ;;  %v3833_v20 = vpop.permute.xlu1 %1606  ;;  %v1782_v52 = vmul.f32 %v1774_v24, %v3742_v39  ;;  %v1463_v39 = vmul.f32 %v4345_v9, %v1429_v3  ;;  %v1244_v33 = vmul.f32 %v4347_v47, %v1215_v48  ;;  %v4402_v24 = vld [vmem:[#allocation88_spill] sm:$0xff]  ;;  %v4405_v53 = vld [vmem:[#allocation86_spill] sm:$0xff] }
 0x2ac   :  { %v1619_v22 = vpop.permute.xlu0 %1618  ;;  %v1556_v6 = vmul.f32 %v4344_v7, %v1522_v16  ;;  %v1563_v25 = vmul.f32 %v4356_v27, %v1528_v56  ;;  %v1211_v13 = vsel %vm1206_vm3, %v4398_v12, %v4346_v63  ;;  %v1209_v49 = vsel %vm1206_vm3, %v4402_v24, %v3686_v41  ;;  %v4406_v56 = vld [vmem:[#allocation84_spill] sm:$0xff] }
 0x2ad   :  { %2079 = verf.f32 %v1747_v0  ;;  %v1838_v46 = vadd.f32 %v1830_v43, %v1782_v52  ;;  %v1564_v43 = vmul.f32 %v4356_v27, %v1524_v38  ;;  %v1571_v3 = vadd.f32 %v1555_v59, %v1462_v61  ;;  %v4404_v52 = vld [vmem:[#allocation73_spill] sm:$0xff]  ;;  %v4407_v61 = vld [vmem:[#allocation35_spill] sm:$0xff] }
 0x2ae   :  { %v1572_v1 = vadd.f32 %v1556_v6, %v1463_v39  ;;  %v1579_v34 = vadd.f32 %v1563_v25, %v1470_v30  ;;  %v1664_v48 = vmul.f32 %v4403_v17, %v1635_v10  ;;  %v1260_v16 = vadd.f32 %v1244_v33, %v4404_v52  ;;  %v4409_v52 = vld [vmem:[#allocation40_spill] sm:$0xff] }
 0x2af   :  { %v3860_v18 = vpop.permute.xlu1 %1614  ;;  %1946 = vmatprep.subr.mxu1 %v1838_v46  ;;  %v3874_v0 = vadd.f32 %v1564_v43, %v1471_v60  ;;  %v1217_v63 = vsel %vm1206_vm3, %v4406_v56, %v4405_v53  ;;  %v1219_v41 = vsel %vm1206_vm3, %v3737_v14, %v4399_v40  ;;  %v1245_v12 = vmul.f32 %v4347_v47, %v1211_v13 }
 0x2b0   :  { %1947 = vmatpush1.msra.mxu1 %v1837_v29  ;;  %v3871_v4 = vpop.permute.xlu0 %1283  ;;  %v1213_v38 = vsel %vm1206_vm3, %v4405_v53, %v4402_v24  ;;  %v1254_v39 = vmul.f32 %v4407_v61, %v1209_v49  ;;  %v1637_v30 = vsel %vm1626_vm4, %v3803_v11, %v3833_v20  ;;  %v1787_v60 = vmul.f32 0.5, %v3792_v15  ;;  %v4408_v24 = vld [vmem:[#allocation39_spill] sm:$0xff]  ;;  %v4412_v11 = vld [vmem:[#allocation53_spill] sm:$0xff] }
 0x2b1   :  { %v1631_v14 = vsel %vm1626_vm4, %v3799_v58, %v1611_v45  ;;  %v1627_v40 = vsel %vm1626_vm4, %v1611_v45, %v1619_v22  ;;  %v1252_v59 = vmul.f32 %v4407_v61, %v1217_v63  ;;  %v1243_v6 = vmul.f32 %v4347_v47, %v1219_v41  ;;  %v4411_v47 = vld [vmem:[#allocation56_spill] sm:$0xff] }
 0x2b2   :  { %v1680_v25 = vadd.f32 %v1664_v48, %v1571_v3  ;;  %v1253_v13 = vmul.f32 %v4407_v61, %v1213_v38  ;;  %v1672_v49 = vmul.f32 %v4408_v24, %v1637_v30  ;;  %v1261_v45 = vadd.f32 %v1245_v12, %v4410_v42 }
 0x2b3   :  { %v2078_v29 = vpop.eup %2077  ;;  %v1623_v46 = vpop.permute.xlu1 %1622  ;;  %v1665_v22 = vmul.f32 %v4403_v17, %v1631_v14  ;;  %v1666_v63 = vmul.f32 %v4403_v17, %v1627_v40  ;;  %v1268_v3 = vadd.f32 %v1252_v59, %v4411_v47  ;;  %v3916_v48 = vadd.f32 %v1254_v39, %v3679_v8 }
 0x2b4   :  { %v1292_v33 = vpop.permute.xlu0 %1291  ;;  %v1811_v10 = vadd.f32 1.0, %v2078_v29  ;;  %v1269_v30 = vadd.f32 %v1253_v13, %v4412_v11  ;;  %v1437_v42 = vsel %vm1424_vm0, %v3755_v55, %v4393_v51  ;;  %v1704_v12 = vsel %vm3645_vm7, %v1680_v25, 0.0 }
 0x2b5   :  { %v1324_v43 = vsel %vm1315_vm6, %v3871_v4, %v1292_v33  ;;  %v1530_v11 = vsel %vm1517_vm2, %v3768_v50, %v4395_v54  ;;  %v1688_v39 = vadd.f32 %v1672_v49, %v1579_v34  ;;  %v1739_v40 = vmul.f32 0.5, %v3810_v32 }
 0x2b6   :  { %v1353_v58 = vmul.f32 %v4409_v52, %v1324_v43  ;;  %v1819_v53 = vmul.f32 %v1811_v10, %v1787_v60  ;;  %v3921_v60 = vadd.f32 %v1243_v6, %v3602_v44  ;;  %v1681_v55 = vadd.f32 %v1665_v22, %v1572_v1 }
 0x2b7   :  { %v3912_v29 = vpop.permute.xlu1 %1287  ;;  %v1682_v51 = vadd.f32 %v1666_v63, %v3608_v19  ;;  %v4413_v19 = vld [vmem:[#allocation41_spill] sm:$0xff] }
 0x2b8   :  { %v1369_v41 = vadd.f32 %v1353_v58, %v1260_v16  ;;  %v1300_v38 = vpop.permute.xlu0 %1299  ;;  %v1827_v43 = vmul.f32 %v1819_v53, %v3810_v32  ;;  %v1629_v32 = vsel %vm1626_vm4, %v3860_v18, %v1623_v46 }
 0x2b9   :  { %v1320_v8 = vsel %vm1315_vm6, %v1292_v33, %v1300_v38  ;;  %v1633_v33 = vsel %vm1626_vm4, %v3833_v20, %v3860_v18  ;;  %v1712_v20 = vsel %vm3645_vm7, %v1688_v39, 0.0  ;;  %v1706_v53 = vsel %vm3700_vm8, %v1682_v51, 0.0 }
 0x2ba   :  { %v2080_v16 = vpop.eup %2079  ;;  %v3935_v44 = vadd.f32 %v1704_v12, %v1369_v41  ;;  %v1354_v14 = vmul.f32 %v4409_v52, %v1320_v8  ;;  %v1674_v63 = vmul.f32 %v4408_v24, %v1629_v32 }
 0x2bb   :  { %v1296_v10 = vpop.permute.xlu1 %1295  ;;  %v1763_v59 = vadd.f32 1.0, %v2080_v16 }
 0x2bc   :  { %v1792_v6 = vmul.f32 0.70710677, %v3935_v44  ;;  %v1370_v50 = vadd.f32 %v1354_v14, %v1261_v45  ;;  %v1326_v54 = vsel %vm1315_vm6, %v3912_v29, %v1296_v10  ;;  %v1308_v34 = vpop.permute.xlu0 %1307  ;;  %v1673_v45 = vmul.f32 %v4408_v24, %v1633_v33 }
 0x2bd   :  { %v1361_v1 = vmul.f32 %v4413_v19, %v1326_v54  ;;  %v1316_v25 = vsel %vm1315_vm6, %v1300_v38, %v1308_v34  ;;  %v1771_v13 = vmul.f32 %v1763_v59, %v1739_v40  ;;  %v1461_v14 = vmul.f32 %v4345_v9, %v1437_v42 }
 0x2be   :  { %2081 = verf.f32 %v1792_v6  ;;  %v3956_v49 = vadd.f32 %v1681_v55, %v1370_v50  ;;  %v1355_v58 = vmul.f32 %v4409_v52, %v1316_v25  ;;  %v1689_v40 = vadd.f32 %v1673_v45, %v3874_v0  ;;  %v4414_v25 = vld [vmem:[#allocation47_spill] sm:$0xff] }
 0x2bf   :  { %v1377_v18 = vadd.f32 %v1361_v1, %v1268_v3  ;;  %v1304_v46 = vpop.permute.xlu1 %1303  ;;  %v1779_v22 = vmul.f32 %v1771_v13, %v3792_v15  ;;  %v1221_v15 = vsel %vm1206_vm3, %v3751_v62, %v4406_v56  ;;  %v1439_v42 = vsel %vm1424_vm0, %v3778_v31, %v4397_v23  ;;  %v4415_v13 = vld [vmem:[#allocation16_spill] sm:$0xff] }
 0x2c0   :  { %v1793_v47 = vmul.f32 0.70710677, %v3956_v49  ;;  %v1371_v36 = vadd.f32 %v1355_v58, %v3620_v37  ;;  %v1322_v41 = vsel %vm1315_vm6, %v1296_v10, %v1304_v46  ;;  %v1276_v38 = vpop.permute.xlu0 %1275  ;;  %v1554_v37 = vmul.f32 %v4344_v7, %v1530_v11 }
 0x2c1   :  { %v3968_v12 = vadd.f32 %v1712_v20, %v1377_v18  ;;  %v1362_v8 = vmul.f32 %v4413_v19, %v1322_v41  ;;  %v1328_v3 = vsel %vm1315_vm6, %v1276_v38, %v3871_v4  ;;  %v1835_v16 = vadd.f32 %v1827_v43, %v1779_v22 }
 0x2c2   :  { %2083 = verf.f32 %v1793_v47  ;;  %v3979_v39 = vadd.f32 %v1706_v53, %v1371_v36  ;;  %v1690_v4 = vadd.f32 %v1674_v63, %v3684_v5  ;;  %v1352_v62 = vmul.f32 %v4409_v52, %v1328_v3 }
 0x2c3   :  { %v1744_v55 = vmul.f32 0.70710677, %v3968_v12  ;;  %v1378_v51 = vadd.f32 %v1362_v8, %v1269_v30  ;;  %v1312_v10 = vpop.permute.xlu1 %1311  ;;  %1876 = vmatpush1.msra.mxu0 %v1835_v16  ;;  %v1570_v30 = vadd.f32 %v1554_v37, %v1461_v14  ;;  %v1532_v5 = vsel %vm1517_vm2, %v3786_v2, %v4401_v35 }
 0x2c4   :  { %v1794_v43 = vmul.f32 0.70710677, %v3979_v39  ;;  %v1318_v7 = vsel %vm1315_vm6, %v1304_v46, %v1312_v10  ;;  %v1587_v56 = vpop.permute.xlu0 %1586  ;;  %v1368_v50 = vadd.f32 %v1352_v62, %v3921_v60  ;;  %v1251_v35 = vmul.f32 %v4407_v61, %v1221_v15 }
 0x2c5   :  { %2085 = verf.f32 %v1744_v55  ;;  %v1729_v11 = vadd.f32 %v1689_v40, %v1378_v51  ;;  %v1363_v9 = vmul.f32 %v4413_v19, %v1318_v7  ;;  %v1639_v0 = vsel %vm1626_vm4, %v1587_v56, %v3790_v28 }
 0x2c6   :  { %2087 = verf.f32 %v1794_v43  ;;  %v1663_v52 = vmul.f32 %v4403_v17, %v1639_v0  ;;  %v1714_v28 = vsel %vm3700_vm8, %v1690_v4, 0.0  ;;  %v1562_v17 = vmul.f32 %v4356_v27, %v1532_v5 }
 0x2c7   :  { %v1745_v59 = vmul.f32 0.70710677, %v1729_v11  ;;  %v1379_v33 = vadd.f32 %v1363_v9, %v3916_v48  ;;  %v1280_v6 = vpop.permute.xlu1 %1279  ;;  %v1469_v34 = vmul.f32 %v4357_v57, %v1439_v42  ;;  %v1784_v61 = vmul.f32 0.5, %v3935_v44 }
 0x2c8   :  { %v1679_v54 = vadd.f32 %v1663_v52, %v1570_v30  ;;  %v1330_v2 = vsel %vm1315_vm6, %v1280_v6, %v3912_v29  ;;  %v1267_v20 = vadd.f32 %v1251_v35, %v4415_v13  ;;  %v1785_v46 = vmul.f32 0.5, %v3956_v49 }
 0x2c9   :  { %2089 = verf.f32 %v1745_v59  ;;  %v1730_v31 = vadd.f32 %v1714_v28, %v1379_v33  ;;  %v1360_v32 = vmul.f32 %v4413_v19, %v1330_v2  ;;  %v1578_v58 = vadd.f32 %v1562_v17, %v1469_v34  ;;  %v100_v28 = vld [vmem:[%s4056_s7] sm:$0xff] }
 0x2ca   :  { %v4011_v23 = vadd.f32 %v1679_v54, %v1368_v50  ;;  %v1736_v8 = vmul.f32 0.5, %v3968_v12  ;;  %v1737_v55 = vmul.f32 0.5, %v1729_v11 }
 0x2cb   :  { %v2082_v48 = vpop.eup %2081  ;;  %v1746_v21 = vmul.f32 0.70710677, %v1730_v31  ;;  %v1591_v60 = vpop.permute.xlu1 %1590  ;;  %v1376_v19 = vadd.f32 %v1360_v32, %v1267_v20 }
 0x2cc   :  { %v1791_v1 = vmul.f32 0.70710677, %v4011_v23  ;;  %v1641_v29 = vsel %vm1626_vm4, %v1591_v60, %v4414_v25  ;;  %v1808_v27 = vadd.f32 1.0, %v2082_v48  ;;  %v1783_v30 = vmul.f32 0.5, %v4011_v23 }
 0x2cd   :  { %2091 = verf.f32 %v1746_v21  ;;  %v1671_v53 = vmul.f32 %v4408_v24, %v1641_v29  ;;  %v1786_v24 = vmul.f32 0.5, %v3979_v39 }
 0x2ce   :  { %2093 = verf.f32 %v1791_v1  ;;  %v1816_v57 = vmul.f32 %v1808_v27, %v1784_v61 }
 0x2cf   :  { %v2084_v45 = vpop.eup %2083  ;;  %v1687_v18 = vadd.f32 %v1671_v53, %v1578_v58 }
 0x2d0   :  { %v1824_v22 = vmul.f32 %v1816_v57, %v3968_v12  ;;  %v1809_v26 = vadd.f32 1.0, %v2084_v45  ;;  %v1738_v12 = vmul.f32 0.5, %v1730_v31 }
 0x2d1   :  { %v1727_v63 = vadd.f32 %v1687_v18, %v1376_v19 }
 0x2d2   :  { %v2086_v47 = vpop.eup %2085  ;;  %v1817_v36 = vmul.f32 %v1809_v26, %v1785_v46 }
 0x2d3   :  { %v2088_v41 = vpop.eup %2087  ;;  %v1743_v38 = vmul.f32 0.70710677, %v1727_v63  ;;  %v1760_v3 = vadd.f32 1.0, %v2086_v47  ;;  %v1735_v50 = vmul.f32 0.5, %v1727_v63 }
 0x2d4   :  { %v1810_v16 = vadd.f32 1.0, %v2088_v41  ;;  %v1825_v15 = vmul.f32 %v1817_v36, %v1729_v11 }
 0x2d5   :  { %2095 = verf.f32 %v1743_v38  ;;  %v1768_v37 = vmul.f32 %v1760_v3, %v1736_v8 }
 0x2d6   :  { %v2090_v14 = vpop.eup %2089  ;;  %v1818_v40 = vmul.f32 %v1810_v16, %v1786_v24 }
 0x2d7   :  { %v1776_v51 = vmul.f32 %v1768_v37, %v3935_v44  ;;  %v1761_v10 = vadd.f32 1.0, %v2090_v14 }
 0x2d8   :  { %v1826_v4 = vmul.f32 %v1818_v40, %v1730_v31 }
 0x2d9   :  { %v1832_v43 = vadd.f32 %v1824_v22, %v1776_v51  ;;  %v1769_v62 = vmul.f32 %v1761_v10, %v1737_v55 }
 0x2da   :  { %v2092_v7 = vpop.eup %2091 }
 0x2db   :  { %v2094_v56 = vpop.eup %2093  ;;  %1877 = vmatprep.subr.mxu0 %v1832_v43  ;;  %v1762_v9 = vadd.f32 1.0, %v2092_v7  ;;  %v1777_v0 = vmul.f32 %v1769_v62, %v3956_v49 }
 0x2dc   :  { %v1807_v5 = vadd.f32 1.0, %v2094_v56 }
 0x2dd   :  { %v1770_v52 = vmul.f32 %v1762_v9, %v1738_v12  ;;  %v1833_v42 = vadd.f32 %v1825_v15, %v1777_v0 }
 0x2de   :  { %v1815_v59 = vmul.f32 %v1807_v5, %v1783_v30 }
 0x2df   :  { %v1778_v11 = vmul.f32 %v1770_v52, %v3979_v39  ;;  %v1842_v39 = vpop.permute.xlu0 %1841 }
 0x2e0   :  { %v1823_v44 = vmul.f32 %v1815_v59, %v1727_v63 }
 0x2e1   :  { %v1834_v33 = vadd.f32 %v1826_v4, %v1778_v11 }
 0x2e2   :  { %v2096_v6 = vpop.eup %2095 }
 0x2e3   :  { %1948 = vmatprep.subr.mxu1 %v1834_v33  ;;  %v1759_v54 = vadd.f32 1.0, %v2096_v6 }
 0x2e4   :  { %1949 = vmatpush1.msra.mxu1 %v1833_v42 }
 0x2e5   :  { %2026 = vmatmul.mubr.msk.f32.vlgmr.msra.gmra.mxu1 %vm585_vm1, %v100_v28  ;;  %v1767_v49 = vmul.f32 %v1759_v54, %v1735_v50 }
 0x2e7   :  { %v1775_v2 = vmul.f32 %v1767_v49, %v4011_v23 }
 0x2e9   :  { %v1831_v35 = vadd.f32 %v1823_v44, %v1775_v2 }
 0x2eb   :  { %1878 = vmatpush1.msra.mxu0 %v1831_v35 }
 0x2ec   :  { %2025 = vmatmul.mubr.msk.f32.vlgmr.msra.gmra.mxu0 %vm585_vm1, %v100_v28 }
 0x3a5   :  { %v1984_v17 = vpop.f32.mrf.mxu1 }
 0x3a6   :  { %v1985_v31 = vadd.f32 %v1984_v17, %v1842_v39 }
 0x3a7   :  { %v1986_v48 = vpop.f32.mrf.mxu1 }
 0x3a8   :  { %1991 = vst [vmem:[%s4057_s9 + $0x10] sm:$0xff] %v1985_v31  ;;  %v1987_v34 = vadd.f32 %v1986_v48, %v1842_v39 }
 0x3aa   :  { %1992 = vst [vmem:[%s4057_s9 + $0x18] sm:$0xff] %v1987_v34 }
 0x3ac   :  { %v1913_v21 = vpop.f32.mrf.mxu0 }
 0x3ad   :  { %v1914_v32 = vadd.f32 %v1913_v21, %v1842_v39 }
 0x3ae   :  { %v1915_v23 = vpop.f32.mrf.mxu0 }
 0x3af   :  { %1989 = vst [vmem:[%s4057_s9] sm:$0xff] %v1914_v32  ;;  %v1916_v60 = vadd.f32 %v1915_v23, %v1842_v39 }
 0x3b1   :  { %1990 = vst [vmem:[%s4057_s9 + $0x8] sm:$0xff] %v1916_v60 }

</bundles_post_ra>
